<compile_context>
chip_gen: v7x
topology: tpu7x:2x2x1
jax: 0.10.0
libtpu: 0.0.40
codegen_flags: <defaults>
</compile_context>

<pallas_src>
import jax
import jax.numpy as jnp
from jax import lax
from jax.experimental import pallas as pl
from jax.experimental.pallas import tpu as pltpu


def _self_intention_kernel(x_ref, wqkv_ref, bqkv_ref, alpha_ref, out_ref):
    bb, f, d = x_ref.shape
    nb = 8 if d % 8 == 0 else 1           # pivot-block width for the solve

    # ---- fused QKV projection: (bb*F, D) @ (D, 3D) on the MXU -------------
    # Kept in f32: K feeds the ill-conditioned (cond ~ 1/alpha) solve below,
    # so its inputs must not be rounded to bf16.  At production shapes with a
    # large F these inputs can go bf16 (f32 accumulate) per the review.
    x_all = x_ref[...].reshape(bb * f, d)
    qkv = jnp.dot(x_all, wqkv_ref[...],
                  preferred_element_type=jnp.float32) + bqkv_ref[...]
    qkv = qkv.reshape(bb, f, 3 * d)
    q = qkv[:, :, :d]
    k = qkv[:, :, d:2 * d]
    v = qkv[:, :, 2 * d:]

    # ---- S = K^T K + diag(alpha), R = K^T V  (both (bb, D, D), f32) --------
    rid = lax.broadcasted_iota(jnp.int32, (d, d), 0)
    cid = lax.broadcasted_iota(jnp.int32, (d, d), 1)
    alpha_diag = jnp.where(rid == cid,
                           jnp.broadcast_to(alpha_ref[...], (d, d)), 0.0)
    kt = jnp.swapaxes(k, 1, 2)                                   # (bb, D, F)
    s = jnp.einsum('bdf,bfe->bde', kt, k,
                   preferred_element_type=jnp.float32) + alpha_diag
    r = jnp.einsum('bdf,bfe->bde', kt, v,
                   preferred_element_type=jnp.float32)

    # ---- X = S^{-1} R via blocked Gauss-Jordan on [S | R] ------------------
    # TODO(synk): torch.inverse has no Pallas primitive; S is SPD (alpha > 0)
    # so an unpivoted elimination is valid.  Everything stays strictly f32:
    # S's smallest eigenvalues equal alpha (=1e-3), so this step is
    # ill-conditioned and must not use bf16 / approximate arithmetic.
    aug = jnp.concatenate([s, r], axis=-1)                       # (bb, D, 2D)
    panel_row = lax.broadcasted_iota(jnp.int32, (1, nb, 1), 1)   # 0..nb-1
    row_ids = lax.broadcasted_iota(jnp.int32, (1, d, nb), 1)     # row index
    blk_col = lax.broadcasted_iota(jnp.int32, (1, d, nb), 2)     # 0..nb-1

    for t in range(d // nb):               # static -> unrolled (D/8 steps)
        p0 = t * nb
        # (a) reduce the nb x nb pivot block inside the pivot row-panel with a
        #     short scalar sweep; the adjusted-column trick makes row i land
        #     on the scaled pivot row with no extra select/broadcast restore.
        panel = aug[:, p0:p0 + nb, :]                            # (bb, nb, 2D)
        for i in range(nb):
            piv = panel[:, i:i + 1, p0 + i:p0 + i + 1]           # (bb, 1, 1)
            row = panel[:, i:i + 1, :] * (1.0 / piv)             # (bb, 1, 2D)
            colv = panel[:, :, p0 + i:p0 + i + 1]                # (bb, nb, 1)
            col_adj = jnp.where(panel_row == i, colv - 1.0, colv)
            panel = panel - col_adj * row
        # panel == P^{-1} @ aug[:, p0:p0+nb, :]

        # (b) panel update of all D rows on the MXU:
        #     aug <- aug - (aug[:, :, p0:p0+nb] - E_blk) @ panel
        #     (rows p0:p0+nb automatically become `panel`).
        cols = aug[:, :, p0:p0 + nb]                             # (bb, D, nb)
        col_adj = jnp.where(row_ids == p0 + blk_col, cols - 1.0, cols)
        aug = aug - jnp.einsum('bdn,bnw->bdw', col_adj, panel,
                               preferred_element_type=jnp.float32)

    kkikv = aug[:, :, d:]                                        # = S^{-1} K^T V

    # ---- softmax over the last dim (sigma=True path) ------------------------
    m = jnp.max(kkikv, axis=-1, keepdims=True)
    e = jnp.exp(kkikv - m)
    den = jnp.sum(e, axis=-1, keepdims=True)
    itn = e * pl.reciprocal(den)          # exact reciprocal (review: accuracy)

    # ---- h = Q @ itn: post-solve, safe in bf16 on the MXU --------------------
    h = jnp.einsum('bfd,bde->bfe',
                   q.astype(jnp.bfloat16), itn.astype(jnp.bfloat16),
                   preferred_element_type=jnp.float32)
    out_ref[...] = h.astype(out_ref.dtype)                       # one bulk store


@jax.jit
def self_intention_pallas(x, wq, bq, wk, bk, wv, bv, alpha):
    """x: (B, F, D); weights use the torch convention (out, in) = (D, D)."""
    b, f, d = x.shape

    # Fuse + pre-transpose the QKV weights so the kernel does one x @ W_qkv.
    w_qkv = jnp.concatenate([wq.T, wk.T, wv.T], axis=1)          # (D, 3D)
    b_qkv = jnp.concatenate([bq, bk, bv]).reshape(1, 3 * d)      # (1, 3D)
    alpha2 = alpha.reshape(1, d)

    # Batch-block sizing: keep >= 2 grid steps whenever B >= 2 (v7x megacore +
    # DMA pipelining), then grow bb so the fused QKV matmul sees ~256 rows.
    target_rows = 256
    min_grid = 2 if b >= 2 else 1
    bb_want = max(1, min(b // min_grid, pl.cdiv(target_rows, f)))
    bb = 1
    for cand in range(bb_want, 0, -1):
        if b % cand == 0:
            bb = cand
            break

    return pl.pallas_call(
        _self_intention_kernel,
        out_shape=jax.ShapeDtypeStruct((b, f, d), jnp.float32),
        grid=(b // bb,),
        in_specs=[
            pl.BlockSpec((bb, f, d), lambda i: (i, 0, 0)),       # x
            pl.BlockSpec((d, 3 * d), lambda i: (0, 0)),          # [Wq^T|Wk^T|Wv^T]
            pl.BlockSpec((1, 3 * d), lambda i: (0, 0)),          # [bq|bk|bv]
            pl.BlockSpec((1, d), lambda i: (0, 0)),              # alpha
        ],
        # D=32 < 128 so the writeback is lane-masked, but it is ~1 KiB/step;
        # a lane-dense (B, F*D) presentation would need an in-kernel relayout
        # that costs more than the tiny masked stores it saves at this D.
        out_specs=pl.BlockSpec((bb, f, d), lambda i: (i, 0, 0)),
        compiler_params=pltpu.CompilerParams(
            dimension_semantics=("parallel",)),
    )(x, w_qkv, b_qkv, alpha2)


def self_intention_reference(x, wq, bq, wk, bk, wv, bv, alpha):
    """Pure-JAX reference matching the PyTorch module."""
    q = x @ wq.T + bq
    k = x @ wk.T + bk
    v = x @ wv.T + bv
    key_sym = jnp.einsum('bfd,bfe->bde', k, k) + jnp.diag(alpha)[None]
    inv = jnp.linalg.inv(key_sym)
    kkik = jnp.einsum('bde,bfe->bdf', inv, k)
    kkikv = jnp.einsum('bdf,bfe->bde', kkik, v)
    itn = jax.nn.softmax(kkikv, axis=2)
    return jnp.einsum('bfd,bde->bfe', q, itn)


if __name__ == "__main__":
    B, F, D = 2, 8, 32   # batch, seq/features, input_dim
    ALPHA = 0.001

    key = jax.random.PRNGKey(0)
    kx, kwq, kbq, kwk, kbk, kwv, kbv = jax.random.split(key, 7)
    bound = 1.0 / jnp.sqrt(D)  # torch nn.Linear default init range

    x = jax.random.normal(kx, (B, F, D), dtype=jnp.float32)
    wq = jax.random.uniform(kwq, (D, D), jnp.float32, -bound, bound)
    bq = jax.random.uniform(kbq, (D,), jnp.float32, -bound, bound)
    wk = jax.random.uniform(kwk, (D, D), jnp.float32, -bound, bound)
    bk = jax.random.uniform(kbk, (D,), jnp.float32, -bound, bound)
    wv = jax.random.uniform(kwv, (D, D), jnp.float32, -bound, bound)
    bv = jax.random.uniform(kbv, (D,), jnp.float32, -bound, bound)
    alpha = jnp.full((D,), ALPHA, dtype=jnp.float32)

    out = self_intention_pallas(x, wq, bq, wk, bk, wv, bv, alpha)
    out = jax.block_until_ready(out)

    ref = self_intention_reference(x, wq, bq, wk, bk, wv, bv, alpha)
    ref = jax.block_until_ready(ref)

    assert out.shape == (B, F, D)
    assert bool(jnp.all(jnp.isfinite(out)))
    # Tolerance covers the ill-conditioned f32 solve (alpha=1e-3) and the
    # bf16 operands of the final (post-solve, post-softmax) matmul.
    max_err = float(jnp.max(jnp.abs(out - ref)))
    assert max_err < 2e-2, f"mismatch vs reference: {max_err}"

    print("KERNEL_OK")
</pallas_src>

<mosaic_0001>
module attributes {stable_mosaic.version = 11 : i64} {
  func.func @_self_intention_kernel(%arg0: i32, %arg1: memref<1x8x32xf32, #tpu.memory_space<vmem>>, %arg2: memref<32x96xf32, #tpu.memory_space<vmem>>, %arg3: memref<1x96xf32, #tpu.memory_space<vmem>>, %arg4: memref<1x32xf32, #tpu.memory_space<vmem>>, %arg5: memref<1x8x32xf32, #tpu.memory_space<vmem>>) attributes {dimension_semantics = [#tpu.dimension_semantics<parallel>], iteration_bounds = array<i64: 2>, scalar_prefetch = 0 : i64, scratch_operands = 0 : i64, tpu.core_type = #tpu.core_type<tc>, window_params = [{transform_indices = @transform_0, window_bounds = array<i64: 1, 8, 32>}, {pipeline_mode = #tpu.pipeline_mode<synchronous>, transform_indices = @transform_1, window_bounds = array<i64: 32, 96>}, {pipeline_mode = #tpu.pipeline_mode<synchronous>, transform_indices = @transform_2, window_bounds = array<i64: 1, 96>}, {pipeline_mode = #tpu.pipeline_mode<synchronous>, transform_indices = @transform_3, window_bounds = array<i64: 1, 32>}, {transform_indices = @transform_4, window_bounds = array<i64: 1, 8, 32>}]} {
    %c0 = arith.constant 0 : index
    %c0_0 = arith.constant 0 : index
    %c0_1 = arith.constant 0 : index
    %0 = vector.load %arg1[%c0, %c0_0, %c0_1] : memref<1x8x32xf32, #tpu.memory_space<vmem>>, vector<1x8x32xf32>
    %1 = vector.shape_cast %0 : vector<1x8x32xf32> to vector<8x32xf32>
    %c0_2 = arith.constant 0 : index
    %c0_3 = arith.constant 0 : index
    %2 = vector.load %arg2[%c0_2, %c0_3] : memref<32x96xf32, #tpu.memory_space<vmem>>, vector<32x96xf32>
    %cst = arith.constant dense<0.000000e+00> : vector<8x96xf32>
    %3 = tpu.matmul %1, %2, %cst {dimension_numbers = #tpu.dot_dimension_numbers<[1], [0], [0], [1], [0, 0, 1, 1], [], []>} : vector<8x32xf32>, vector<32x96xf32>, vector<8x96xf32> -> vector<8x96xf32>
    %c0_4 = arith.constant 0 : index
    %c0_5 = arith.constant 0 : index
    %4 = vector.load %arg3[%c0_4, %c0_5] : memref<1x96xf32, #tpu.memory_space<vmem>>, vector<1x96xf32>
    %5 = vector.broadcast %4 : vector<1x96xf32> to vector<8x96xf32>
    %6 = arith.addf %3, %5 : vector<8x96xf32>
    %7 = vector.shape_cast %6 : vector<8x96xf32> to vector<1x8x96xf32>
    %8 = vector.extract_strided_slice %7 {offsets = [0, 0, 0], sizes = [1, 8, 32], strides = [1, 1, 1]} : vector<1x8x96xf32> to vector<1x8x32xf32>
    %9 = vector.extract_strided_slice %7 {offsets = [0, 0, 32], sizes = [1, 8, 32], strides = [1, 1, 1]} : vector<1x8x96xf32> to vector<1x8x32xf32>
    %10 = vector.extract_strided_slice %7 {offsets = [0, 0, 64], sizes = [1, 8, 32], strides = [1, 1, 1]} : vector<1x8x96xf32> to vector<1x8x32xf32>
    %11 = tpu.iota {dimensions = array<i32: 0>} : vector<32x32xi32>
    %12 = tpu.iota {dimensions = array<i32: 1>} : vector<32x32xi32>
    %13 = arith.cmpi eq, %11, %12 : vector<32x32xi32>
    %c0_6 = arith.constant 0 : index
    %c0_7 = arith.constant 0 : index
    %14 = vector.load %arg4[%c0_6, %c0_7] : memref<1x32xf32, #tpu.memory_space<vmem>>, vector<1x32xf32>
    %15 = vector.shape_cast %14 : vector<1x32xf32> to vector<1x32xf32>
    %16 = vector.broadcast %15 : vector<1x32xf32> to vector<32x32xf32>
    %cst_8 = arith.constant 0.000000e+00 : f32
    %17 = vector.broadcast %cst_8 : f32 to vector<32x32xf32>
    %18 = arith.select %13, %16, %17 : vector<32x32xi1>, vector<32x32xf32>
    %19 = tpu.transpose %9, [0, 2, 1] : vector<1x8x32xf32> -> vector<1x32x8xf32>
    "tpu.trace_start"() <{level = 10 : i32, message = "bdf,bfe->bde"}> : () -> ()
    %cst_9 = arith.constant dense<0.000000e+00> : vector<1x32x32xf32>
    %20 = tpu.matmul %19, %9, %cst_9 {dimension_numbers = #tpu.dot_dimension_numbers<[2], [1], [1], [2], [0, 0, 0, 1, 1, 2], [0], [0]>} : vector<1x32x8xf32>, vector<1x8x32xf32>, vector<1x32x32xf32> -> vector<1x32x32xf32>
    "tpu.trace_stop"() : () -> ()
    %21 = vector.shape_cast %18 : vector<32x32xf32> to vector<1x32x32xf32>
    %22 = arith.addf %20, %21 : vector<1x32x32xf32>
    "tpu.trace_start"() <{level = 10 : i32, message = "bdf,bfe->bde"}> : () -> ()
    %cst_10 = arith.constant dense<0.000000e+00> : vector<1x32x32xf32>
    %23 = tpu.matmul %19, %10, %cst_10 {dimension_numbers = #tpu.dot_dimension_numbers<[2], [1], [1], [2], [0, 0, 0, 1, 1, 2], [0], [0]>} : vector<1x32x8xf32>, vector<1x8x32xf32>, vector<1x32x32xf32> -> vector<1x32x32xf32>
    "tpu.trace_stop"() : () -> ()
    %24 = tpu.concatenate %22, %23 in 2 : vector<1x32x32xf32>, vector<1x32x32xf32> -> vector<1x32x64xf32>
    %25 = tpu.iota {dimensions = array<i32: 1>} : vector<1x8x1xi32>
    %26 = tpu.iota {dimensions = array<i32: 1>} : vector<1x32x8xi32>
    %27 = tpu.iota {dimensions = array<i32: 2>} : vector<1x32x8xi32>
    %28 = vector.extract_strided_slice %24 {offsets = [0, 0, 0], sizes = [1, 8, 64], strides = [1, 1, 1]} : vector<1x32x64xf32> to vector<1x8x64xf32>
    %29 = vector.extract_strided_slice %28 {offsets = [0, 0, 0], sizes = [1, 1, 1], strides = [1, 1, 1]} : vector<1x8x64xf32> to vector<1x1x1xf32>
    %30 = vector.extract_strided_slice %28 {offsets = [0, 0, 0], sizes = [1, 1, 64], strides = [1, 1, 1]} : vector<1x8x64xf32> to vector<1x1x64xf32>
    %cst_11 = arith.constant 1.000000e+00 : f32
    %31 = vector.broadcast %cst_11 : f32 to vector<1x1x1xf32>
    %32 = arith.divf %31, %29 : vector<1x1x1xf32>
    %33 = vector.broadcast %32 : vector<1x1x1xf32> to vector<1x1x64xf32>
    %34 = arith.mulf %30, %33 : vector<1x1x64xf32>
    %35 = vector.extract_strided_slice %28 {offsets = [0, 0, 0], sizes = [1, 8, 1], strides = [1, 1, 1]} : vector<1x8x64xf32> to vector<1x8x1xf32>
    %c0_i32 = arith.constant 0 : i32
    %36 = vector.broadcast %c0_i32 : i32 to vector<1x8x1xi32>
    %37 = arith.cmpi eq, %25, %36 : vector<1x8x1xi32>
    %cst_12 = arith.constant 1.000000e+00 : f32
    %38 = vector.broadcast %cst_12 : f32 to vector<1x8x1xf32>
    %39 = arith.subf %35, %38 : vector<1x8x1xf32>
    %40 = arith.select %37, %39, %35 : vector<1x8x1xi1>, vector<1x8x1xf32>
    %41 = vector.broadcast %40 : vector<1x8x1xf32> to vector<1x8x64xf32>
    %42 = vector.broadcast %34 : vector<1x1x64xf32> to vector<1x8x64xf32>
    %43 = arith.mulf %41, %42 : vector<1x8x64xf32>
    %44 = arith.subf %28, %43 : vector<1x8x64xf32>
    %45 = vector.extract_strided_slice %44 {offsets = [0, 1, 1], sizes = [1, 1, 1], strides = [1, 1, 1]} : vector<1x8x64xf32> to vector<1x1x1xf32>
    %46 = vector.extract_strided_slice %44 {offsets = [0, 1, 0], sizes = [1, 1, 64], strides = [1, 1, 1]} : vector<1x8x64xf32> to vector<1x1x64xf32>
    %cst_13 = arith.constant 1.000000e+00 : f32
    %47 = vector.broadcast %cst_13 : f32 to vector<1x1x1xf32>
    %48 = arith.divf %47, %45 : vector<1x1x1xf32>
    %49 = vector.broadcast %48 : vector<1x1x1xf32> to vector<1x1x64xf32>
    %50 = arith.mulf %46, %49 : vector<1x1x64xf32>
    %51 = vector.extract_strided_slice %44 {offsets = [0, 0, 1], sizes = [1, 8, 1], strides = [1, 1, 1]} : vector<1x8x64xf32> to vector<1x8x1xf32>
    %c1_i32 = arith.constant 1 : i32
    %52 = vector.broadcast %c1_i32 : i32 to vector<1x8x1xi32>
    %53 = arith.cmpi eq, %25, %52 : vector<1x8x1xi32>
    %cst_14 = arith.constant 1.000000e+00 : f32
    %54 = vector.broadcast %cst_14 : f32 to vector<1x8x1xf32>
    %55 = arith.subf %51, %54 : vector<1x8x1xf32>
    %56 = arith.select %53, %55, %51 : vector<1x8x1xi1>, vector<1x8x1xf32>
    %57 = vector.broadcast %56 : vector<1x8x1xf32> to vector<1x8x64xf32>
    %58 = vector.broadcast %50 : vector<1x1x64xf32> to vector<1x8x64xf32>
    %59 = arith.mulf %57, %58 : vector<1x8x64xf32>
    %60 = arith.subf %44, %59 : vector<1x8x64xf32>
    %61 = vector.extract_strided_slice %60 {offsets = [0, 2, 2], sizes = [1, 1, 1], strides = [1, 1, 1]} : vector<1x8x64xf32> to vector<1x1x1xf32>
    %62 = vector.extract_strided_slice %60 {offsets = [0, 2, 0], sizes = [1, 1, 64], strides = [1, 1, 1]} : vector<1x8x64xf32> to vector<1x1x64xf32>
    %cst_15 = arith.constant 1.000000e+00 : f32
    %63 = vector.broadcast %cst_15 : f32 to vector<1x1x1xf32>
    %64 = arith.divf %63, %61 : vector<1x1x1xf32>
    %65 = vector.broadcast %64 : vector<1x1x1xf32> to vector<1x1x64xf32>
    %66 = arith.mulf %62, %65 : vector<1x1x64xf32>
    %67 = vector.extract_strided_slice %60 {offsets = [0, 0, 2], sizes = [1, 8, 1], strides = [1, 1, 1]} : vector<1x8x64xf32> to vector<1x8x1xf32>
    %c2_i32 = arith.constant 2 : i32
    %68 = vector.broadcast %c2_i32 : i32 to vector<1x8x1xi32>
    %69 = arith.cmpi eq, %25, %68 : vector<1x8x1xi32>
    %cst_16 = arith.constant 1.000000e+00 : f32
    %70 = vector.broadcast %cst_16 : f32 to vector<1x8x1xf32>
    %71 = arith.subf %67, %70 : vector<1x8x1xf32>
    %72 = arith.select %69, %71, %67 : vector<1x8x1xi1>, vector<1x8x1xf32>
    %73 = vector.broadcast %72 : vector<1x8x1xf32> to vector<1x8x64xf32>
    %74 = vector.broadcast %66 : vector<1x1x64xf32> to vector<1x8x64xf32>
    %75 = arith.mulf %73, %74 : vector<1x8x64xf32>
    %76 = arith.subf %60, %75 : vector<1x8x64xf32>
    %77 = vector.extract_strided_slice %76 {offsets = [0, 3, 3], sizes = [1, 1, 1], strides = [1, 1, 1]} : vector<1x8x64xf32> to vector<1x1x1xf32>
    %78 = vector.extract_strided_slice %76 {offsets = [0, 3, 0], sizes = [1, 1, 64], strides = [1, 1, 1]} : vector<1x8x64xf32> to vector<1x1x64xf32>
    %cst_17 = arith.constant 1.000000e+00 : f32
    %79 = vector.broadcast %cst_17 : f32 to vector<1x1x1xf32>
    %80 = arith.divf %79, %77 : vector<1x1x1xf32>
    %81 = vector.broadcast %80 : vector<1x1x1xf32> to vector<1x1x64xf32>
    %82 = arith.mulf %78, %81 : vector<1x1x64xf32>
    %83 = vector.extract_strided_slice %76 {offsets = [0, 0, 3], sizes = [1, 8, 1], strides = [1, 1, 1]} : vector<1x8x64xf32> to vector<1x8x1xf32>
    %c3_i32 = arith.constant 3 : i32
    %84 = vector.broadcast %c3_i32 : i32 to vector<1x8x1xi32>
    %85 = arith.cmpi eq, %25, %84 : vector<1x8x1xi32>
    %cst_18 = arith.constant 1.000000e+00 : f32
    %86 = vector.broadcast %cst_18 : f32 to vector<1x8x1xf32>
    %87 = arith.subf %83, %86 : vector<1x8x1xf32>
    %88 = arith.select %85, %87, %83 : vector<1x8x1xi1>, vector<1x8x1xf32>
    %89 = vector.broadcast %88 : vector<1x8x1xf32> to vector<1x8x64xf32>
    %90 = vector.broadcast %82 : vector<1x1x64xf32> to vector<1x8x64xf32>
    %91 = arith.mulf %89, %90 : vector<1x8x64xf32>
    %92 = arith.subf %76, %91 : vector<1x8x64xf32>
    %93 = vector.extract_strided_slice %92 {offsets = [0, 4, 4], sizes = [1, 1, 1], strides = [1, 1, 1]} : vector<1x8x64xf32> to vector<1x1x1xf32>
    %94 = vector.extract_strided_slice %92 {offsets = [0, 4, 0], sizes = [1, 1, 64], strides = [1, 1, 1]} : vector<1x8x64xf32> to vector<1x1x64xf32>
    %cst_19 = arith.constant 1.000000e+00 : f32
    %95 = vector.broadcast %cst_19 : f32 to vector<1x1x1xf32>
    %96 = arith.divf %95, %93 : vector<1x1x1xf32>
    %97 = vector.broadcast %96 : vector<1x1x1xf32> to vector<1x1x64xf32>
    %98 = arith.mulf %94, %97 : vector<1x1x64xf32>
    %99 = vector.extract_strided_slice %92 {offsets = [0, 0, 4], sizes = [1, 8, 1], strides = [1, 1, 1]} : vector<1x8x64xf32> to vector<1x8x1xf32>
    %c4_i32 = arith.constant 4 : i32
    %100 = vector.broadcast %c4_i32 : i32 to vector<1x8x1xi32>
    %101 = arith.cmpi eq, %25, %100 : vector<1x8x1xi32>
    %cst_20 = arith.constant 1.000000e+00 : f32
    %102 = vector.broadcast %cst_20 : f32 to vector<1x8x1xf32>
    %103 = arith.subf %99, %102 : vector<1x8x1xf32>
    %104 = arith.select %101, %103, %99 : vector<1x8x1xi1>, vector<1x8x1xf32>
    %105 = vector.broadcast %104 : vector<1x8x1xf32> to vector<1x8x64xf32>
    %106 = vector.broadcast %98 : vector<1x1x64xf32> to vector<1x8x64xf32>
    %107 = arith.mulf %105, %106 : vector<1x8x64xf32>
    %108 = arith.subf %92, %107 : vector<1x8x64xf32>
    %109 = vector.extract_strided_slice %108 {offsets = [0, 5, 5], sizes = [1, 1, 1], strides = [1, 1, 1]} : vector<1x8x64xf32> to vector<1x1x1xf32>
    %110 = vector.extract_strided_slice %108 {offsets = [0, 5, 0], sizes = [1, 1, 64], strides = [1, 1, 1]} : vector<1x8x64xf32> to vector<1x1x64xf32>
    %cst_21 = arith.constant 1.000000e+00 : f32
    %111 = vector.broadcast %cst_21 : f32 to vector<1x1x1xf32>
    %112 = arith.divf %111, %109 : vector<1x1x1xf32>
    %113 = vector.broadcast %112 : vector<1x1x1xf32> to vector<1x1x64xf32>
    %114 = arith.mulf %110, %113 : vector<1x1x64xf32>
    %115 = vector.extract_strided_slice %108 {offsets = [0, 0, 5], sizes = [1, 8, 1], strides = [1, 1, 1]} : vector<1x8x64xf32> to vector<1x8x1xf32>
    %c5_i32 = arith.constant 5 : i32
    %116 = vector.broadcast %c5_i32 : i32 to vector<1x8x1xi32>
    %117 = arith.cmpi eq, %25, %116 : vector<1x8x1xi32>
    %cst_22 = arith.constant 1.000000e+00 : f32
    %118 = vector.broadcast %cst_22 : f32 to vector<1x8x1xf32>
    %119 = arith.subf %115, %118 : vector<1x8x1xf32>
    %120 = arith.select %117, %119, %115 : vector<1x8x1xi1>, vector<1x8x1xf32>
    %121 = vector.broadcast %120 : vector<1x8x1xf32> to vector<1x8x64xf32>
    %122 = vector.broadcast %114 : vector<1x1x64xf32> to vector<1x8x64xf32>
    %123 = arith.mulf %121, %122 : vector<1x8x64xf32>
    %124 = arith.subf %108, %123 : vector<1x8x64xf32>
    %125 = vector.extract_strided_slice %124 {offsets = [0, 6, 6], sizes = [1, 1, 1], strides = [1, 1, 1]} : vector<1x8x64xf32> to vector<1x1x1xf32>
    %126 = vector.extract_strided_slice %124 {offsets = [0, 6, 0], sizes = [1, 1, 64], strides = [1, 1, 1]} : vector<1x8x64xf32> to vector<1x1x64xf32>
    %cst_23 = arith.constant 1.000000e+00 : f32
    %127 = vector.broadcast %cst_23 : f32 to vector<1x1x1xf32>
    %128 = arith.divf %127, %125 : vector<1x1x1xf32>
    %129 = vector.broadcast %128 : vector<1x1x1xf32> to vector<1x1x64xf32>
    %130 = arith.mulf %126, %129 : vector<1x1x64xf32>
    %131 = vector.extract_strided_slice %124 {offsets = [0, 0, 6], sizes = [1, 8, 1], strides = [1, 1, 1]} : vector<1x8x64xf32> to vector<1x8x1xf32>
    %c6_i32 = arith.constant 6 : i32
    %132 = vector.broadcast %c6_i32 : i32 to vector<1x8x1xi32>
    %133 = arith.cmpi eq, %25, %132 : vector<1x8x1xi32>
    %cst_24 = arith.constant 1.000000e+00 : f32
    %134 = vector.broadcast %cst_24 : f32 to vector<1x8x1xf32>
    %135 = arith.subf %131, %134 : vector<1x8x1xf32>
    %136 = arith.select %133, %135, %131 : vector<1x8x1xi1>, vector<1x8x1xf32>
    %137 = vector.broadcast %136 : vector<1x8x1xf32> to vector<1x8x64xf32>
    %138 = vector.broadcast %130 : vector<1x1x64xf32> to vector<1x8x64xf32>
    %139 = arith.mulf %137, %138 : vector<1x8x64xf32>
    %140 = arith.subf %124, %139 : vector<1x8x64xf32>
    %141 = vector.extract_strided_slice %140 {offsets = [0, 7, 7], sizes = [1, 1, 1], strides = [1, 1, 1]} : vector<1x8x64xf32> to vector<1x1x1xf32>
    %142 = vector.extract_strided_slice %140 {offsets = [0, 7, 0], sizes = [1, 1, 64], strides = [1, 1, 1]} : vector<1x8x64xf32> to vector<1x1x64xf32>
    %cst_25 = arith.constant 1.000000e+00 : f32
    %143 = vector.broadcast %cst_25 : f32 to vector<1x1x1xf32>
    %144 = arith.divf %143, %141 : vector<1x1x1xf32>
    %145 = vector.broadcast %144 : vector<1x1x1xf32> to vector<1x1x64xf32>
    %146 = arith.mulf %142, %145 : vector<1x1x64xf32>
    %147 = vector.extract_strided_slice %140 {offsets = [0, 0, 7], sizes = [1, 8, 1], strides = [1, 1, 1]} : vector<1x8x64xf32> to vector<1x8x1xf32>
    %c7_i32 = arith.constant 7 : i32
    %148 = vector.broadcast %c7_i32 : i32 to vector<1x8x1xi32>
    %149 = arith.cmpi eq, %25, %148 : vector<1x8x1xi32>
    %cst_26 = arith.constant 1.000000e+00 : f32
    %150 = vector.broadcast %cst_26 : f32 to vector<1x8x1xf32>
    %151 = arith.subf %147, %150 : vector<1x8x1xf32>
    %152 = arith.select %149, %151, %147 : vector<1x8x1xi1>, vector<1x8x1xf32>
    %153 = vector.broadcast %152 : vector<1x8x1xf32> to vector<1x8x64xf32>
    %154 = vector.broadcast %146 : vector<1x1x64xf32> to vector<1x8x64xf32>
    %155 = arith.mulf %153, %154 : vector<1x8x64xf32>
    %156 = arith.subf %140, %155 : vector<1x8x64xf32>
    %157 = vector.extract_strided_slice %24 {offsets = [0, 0, 0], sizes = [1, 32, 8], strides = [1, 1, 1]} : vector<1x32x64xf32> to vector<1x32x8xf32>
    %c0_i32_27 = arith.constant 0 : i32
    %158 = vector.broadcast %c0_i32_27 : i32 to vector<1x32x8xi32>
    %159 = arith.addi %158, %27 : vector<1x32x8xi32>
    %160 = arith.cmpi eq, %26, %159 : vector<1x32x8xi32>
    %cst_28 = arith.constant 1.000000e+00 : f32
    %161 = vector.broadcast %cst_28 : f32 to vector<1x32x8xf32>
    %162 = arith.subf %157, %161 : vector<1x32x8xf32>
    %163 = arith.select %160, %162, %157 : vector<1x32x8xi1>, vector<1x32x8xf32>
    "tpu.trace_start"() <{level = 10 : i32, message = "bdn,bnw->bdw"}> : () -> ()
    %cst_29 = arith.constant dense<0.000000e+00> : vector<1x32x64xf32>
    %164 = tpu.matmul %163, %156, %cst_29 {dimension_numbers = #tpu.dot_dimension_numbers<[2], [1], [1], [2], [0, 0, 0, 1, 1, 2], [0], [0]>} : vector<1x32x8xf32>, vector<1x8x64xf32>, vector<1x32x64xf32> -> vector<1x32x64xf32>
    "tpu.trace_stop"() : () -> ()
    %165 = arith.subf %24, %164 : vector<1x32x64xf32>
    %166 = vector.extract_strided_slice %165 {offsets = [0, 8, 0], sizes = [1, 8, 64], strides = [1, 1, 1]} : vector<1x32x64xf32> to vector<1x8x64xf32>
    %167 = vector.extract_strided_slice %166 {offsets = [0, 0, 8], sizes = [1, 1, 1], strides = [1, 1, 1]} : vector<1x8x64xf32> to vector<1x1x1xf32>
    %168 = vector.extract_strided_slice %166 {offsets = [0, 0, 0], sizes = [1, 1, 64], strides = [1, 1, 1]} : vector<1x8x64xf32> to vector<1x1x64xf32>
    %cst_30 = arith.constant 1.000000e+00 : f32
    %169 = vector.broadcast %cst_30 : f32 to vector<1x1x1xf32>
    %170 = arith.divf %169, %167 : vector<1x1x1xf32>
    %171 = vector.broadcast %170 : vector<1x1x1xf32> to vector<1x1x64xf32>
    %172 = arith.mulf %168, %171 : vector<1x1x64xf32>
    %173 = vector.extract_strided_slice %166 {offsets = [0, 0, 8], sizes = [1, 8, 1], strides = [1, 1, 1]} : vector<1x8x64xf32> to vector<1x8x1xf32>
    %c0_i32_31 = arith.constant 0 : i32
    %174 = vector.broadcast %c0_i32_31 : i32 to vector<1x8x1xi32>
    %175 = arith.cmpi eq, %25, %174 : vector<1x8x1xi32>
    %cst_32 = arith.constant 1.000000e+00 : f32
    %176 = vector.broadcast %cst_32 : f32 to vector<1x8x1xf32>
    %177 = arith.subf %173, %176 : vector<1x8x1xf32>
    %178 = arith.select %175, %177, %173 : vector<1x8x1xi1>, vector<1x8x1xf32>
    %179 = vector.broadcast %178 : vector<1x8x1xf32> to vector<1x8x64xf32>
    %180 = vector.broadcast %172 : vector<1x1x64xf32> to vector<1x8x64xf32>
    %181 = arith.mulf %179, %180 : vector<1x8x64xf32>
    %182 = arith.subf %166, %181 : vector<1x8x64xf32>
    %183 = vector.extract_strided_slice %182 {offsets = [0, 1, 9], sizes = [1, 1, 1], strides = [1, 1, 1]} : vector<1x8x64xf32> to vector<1x1x1xf32>
    %184 = vector.extract_strided_slice %182 {offsets = [0, 1, 0], sizes = [1, 1, 64], strides = [1, 1, 1]} : vector<1x8x64xf32> to vector<1x1x64xf32>
    %cst_33 = arith.constant 1.000000e+00 : f32
    %185 = vector.broadcast %cst_33 : f32 to vector<1x1x1xf32>
    %186 = arith.divf %185, %183 : vector<1x1x1xf32>
    %187 = vector.broadcast %186 : vector<1x1x1xf32> to vector<1x1x64xf32>
    %188 = arith.mulf %184, %187 : vector<1x1x64xf32>
    %189 = vector.extract_strided_slice %182 {offsets = [0, 0, 9], sizes = [1, 8, 1], strides = [1, 1, 1]} : vector<1x8x64xf32> to vector<1x8x1xf32>
    %c1_i32_34 = arith.constant 1 : i32
    %190 = vector.broadcast %c1_i32_34 : i32 to vector<1x8x1xi32>
    %191 = arith.cmpi eq, %25, %190 : vector<1x8x1xi32>
    %cst_35 = arith.constant 1.000000e+00 : f32
    %192 = vector.broadcast %cst_35 : f32 to vector<1x8x1xf32>
    %193 = arith.subf %189, %192 : vector<1x8x1xf32>
    %194 = arith.select %191, %193, %189 : vector<1x8x1xi1>, vector<1x8x1xf32>
    %195 = vector.broadcast %194 : vector<1x8x1xf32> to vector<1x8x64xf32>
    %196 = vector.broadcast %188 : vector<1x1x64xf32> to vector<1x8x64xf32>
    %197 = arith.mulf %195, %196 : vector<1x8x64xf32>
    %198 = arith.subf %182, %197 : vector<1x8x64xf32>
    %199 = vector.extract_strided_slice %198 {offsets = [0, 2, 10], sizes = [1, 1, 1], strides = [1, 1, 1]} : vector<1x8x64xf32> to vector<1x1x1xf32>
    %200 = vector.extract_strided_slice %198 {offsets = [0, 2, 0], sizes = [1, 1, 64], strides = [1, 1, 1]} : vector<1x8x64xf32> to vector<1x1x64xf32>
    %cst_36 = arith.constant 1.000000e+00 : f32
    %201 = vector.broadcast %cst_36 : f32 to vector<1x1x1xf32>
    %202 = arith.divf %201, %199 : vector<1x1x1xf32>
    %203 = vector.broadcast %202 : vector<1x1x1xf32> to vector<1x1x64xf32>
    %204 = arith.mulf %200, %203 : vector<1x1x64xf32>
    %205 = vector.extract_strided_slice %198 {offsets = [0, 0, 10], sizes = [1, 8, 1], strides = [1, 1, 1]} : vector<1x8x64xf32> to vector<1x8x1xf32>
    %c2_i32_37 = arith.constant 2 : i32
    %206 = vector.broadcast %c2_i32_37 : i32 to vector<1x8x1xi32>
    %207 = arith.cmpi eq, %25, %206 : vector<1x8x1xi32>
    %cst_38 = arith.constant 1.000000e+00 : f32
    %208 = vector.broadcast %cst_38 : f32 to vector<1x8x1xf32>
    %209 = arith.subf %205, %208 : vector<1x8x1xf32>
    %210 = arith.select %207, %209, %205 : vector<1x8x1xi1>, vector<1x8x1xf32>
    %211 = vector.broadcast %210 : vector<1x8x1xf32> to vector<1x8x64xf32>
    %212 = vector.broadcast %204 : vector<1x1x64xf32> to vector<1x8x64xf32>
    %213 = arith.mulf %211, %212 : vector<1x8x64xf32>
    %214 = arith.subf %198, %213 : vector<1x8x64xf32>
    %215 = vector.extract_strided_slice %214 {offsets = [0, 3, 11], sizes = [1, 1, 1], strides = [1, 1, 1]} : vector<1x8x64xf32> to vector<1x1x1xf32>
    %216 = vector.extract_strided_slice %214 {offsets = [0, 3, 0], sizes = [1, 1, 64], strides = [1, 1, 1]} : vector<1x8x64xf32> to vector<1x1x64xf32>
    %cst_39 = arith.constant 1.000000e+00 : f32
    %217 = vector.broadcast %cst_39 : f32 to vector<1x1x1xf32>
    %218 = arith.divf %217, %215 : vector<1x1x1xf32>
    %219 = vector.broadcast %218 : vector<1x1x1xf32> to vector<1x1x64xf32>
    %220 = arith.mulf %216, %219 : vector<1x1x64xf32>
    %221 = vector.extract_strided_slice %214 {offsets = [0, 0, 11], sizes = [1, 8, 1], strides = [1, 1, 1]} : vector<1x8x64xf32> to vector<1x8x1xf32>
    %c3_i32_40 = arith.constant 3 : i32
    %222 = vector.broadcast %c3_i32_40 : i32 to vector<1x8x1xi32>
    %223 = arith.cmpi eq, %25, %222 : vector<1x8x1xi32>
    %cst_41 = arith.constant 1.000000e+00 : f32
    %224 = vector.broadcast %cst_41 : f32 to vector<1x8x1xf32>
    %225 = arith.subf %221, %224 : vector<1x8x1xf32>
    %226 = arith.select %223, %225, %221 : vector<1x8x1xi1>, vector<1x8x1xf32>
    %227 = vector.broadcast %226 : vector<1x8x1xf32> to vector<1x8x64xf32>
    %228 = vector.broadcast %220 : vector<1x1x64xf32> to vector<1x8x64xf32>
    %229 = arith.mulf %227, %228 : vector<1x8x64xf32>
    %230 = arith.subf %214, %229 : vector<1x8x64xf32>
    %231 = vector.extract_strided_slice %230 {offsets = [0, 4, 12], sizes = [1, 1, 1], strides = [1, 1, 1]} : vector<1x8x64xf32> to vector<1x1x1xf32>
    %232 = vector.extract_strided_slice %230 {offsets = [0, 4, 0], sizes = [1, 1, 64], strides = [1, 1, 1]} : vector<1x8x64xf32> to vector<1x1x64xf32>
    %cst_42 = arith.constant 1.000000e+00 : f32
    %233 = vector.broadcast %cst_42 : f32 to vector<1x1x1xf32>
    %234 = arith.divf %233, %231 : vector<1x1x1xf32>
    %235 = vector.broadcast %234 : vector<1x1x1xf32> to vector<1x1x64xf32>
    %236 = arith.mulf %232, %235 : vector<1x1x64xf32>
    %237 = vector.extract_strided_slice %230 {offsets = [0, 0, 12], sizes = [1, 8, 1], strides = [1, 1, 1]} : vector<1x8x64xf32> to vector<1x8x1xf32>
    %c4_i32_43 = arith.constant 4 : i32
    %238 = vector.broadcast %c4_i32_43 : i32 to vector<1x8x1xi32>
    %239 = arith.cmpi eq, %25, %238 : vector<1x8x1xi32>
    %cst_44 = arith.constant 1.000000e+00 : f32
    %240 = vector.broadcast %cst_44 : f32 to vector<1x8x1xf32>
    %241 = arith.subf %237, %240 : vector<1x8x1xf32>
    %242 = arith.select %239, %241, %237 : vector<1x8x1xi1>, vector<1x8x1xf32>
    %243 = vector.broadcast %242 : vector<1x8x1xf32> to vector<1x8x64xf32>
    %244 = vector.broadcast %236 : vector<1x1x64xf32> to vector<1x8x64xf32>
    %245 = arith.mulf %243, %244 : vector<1x8x64xf32>
    %246 = arith.subf %230, %245 : vector<1x8x64xf32>
    %247 = vector.extract_strided_slice %246 {offsets = [0, 5, 13], sizes = [1, 1, 1], strides = [1, 1, 1]} : vector<1x8x64xf32> to vector<1x1x1xf32>
    %248 = vector.extract_strided_slice %246 {offsets = [0, 5, 0], sizes = [1, 1, 64], strides = [1, 1, 1]} : vector<1x8x64xf32> to vector<1x1x64xf32>
    %cst_45 = arith.constant 1.000000e+00 : f32
    %249 = vector.broadcast %cst_45 : f32 to vector<1x1x1xf32>
    %250 = arith.divf %249, %247 : vector<1x1x1xf32>
    %251 = vector.broadcast %250 : vector<1x1x1xf32> to vector<1x1x64xf32>
    %252 = arith.mulf %248, %251 : vector<1x1x64xf32>
    %253 = vector.extract_strided_slice %246 {offsets = [0, 0, 13], sizes = [1, 8, 1], strides = [1, 1, 1]} : vector<1x8x64xf32> to vector<1x8x1xf32>
    %c5_i32_46 = arith.constant 5 : i32
    %254 = vector.broadcast %c5_i32_46 : i32 to vector<1x8x1xi32>
    %255 = arith.cmpi eq, %25, %254 : vector<1x8x1xi32>
    %cst_47 = arith.constant 1.000000e+00 : f32
    %256 = vector.broadcast %cst_47 : f32 to vector<1x8x1xf32>
    %257 = arith.subf %253, %256 : vector<1x8x1xf32>
    %258 = arith.select %255, %257, %253 : vector<1x8x1xi1>, vector<1x8x1xf32>
    %259 = vector.broadcast %258 : vector<1x8x1xf32> to vector<1x8x64xf32>
    %260 = vector.broadcast %252 : vector<1x1x64xf32> to vector<1x8x64xf32>
    %261 = arith.mulf %259, %260 : vector<1x8x64xf32>
    %262 = arith.subf %246, %261 : vector<1x8x64xf32>
    %263 = vector.extract_strided_slice %262 {offsets = [0, 6, 14], sizes = [1, 1, 1], strides = [1, 1, 1]} : vector<1x8x64xf32> to vector<1x1x1xf32>
    %264 = vector.extract_strided_slice %262 {offsets = [0, 6, 0], sizes = [1, 1, 64], strides = [1, 1, 1]} : vector<1x8x64xf32> to vector<1x1x64xf32>
    %cst_48 = arith.constant 1.000000e+00 : f32
    %265 = vector.broadcast %cst_48 : f32 to vector<1x1x1xf32>
    %266 = arith.divf %265, %263 : vector<1x1x1xf32>
    %267 = vector.broadcast %266 : vector<1x1x1xf32> to vector<1x1x64xf32>
    %268 = arith.mulf %264, %267 : vector<1x1x64xf32>
    %269 = vector.extract_strided_slice %262 {offsets = [0, 0, 14], sizes = [1, 8, 1], strides = [1, 1, 1]} : vector<1x8x64xf32> to vector<1x8x1xf32>
    %c6_i32_49 = arith.constant 6 : i32
    %270 = vector.broadcast %c6_i32_49 : i32 to vector<1x8x1xi32>
    %271 = arith.cmpi eq, %25, %270 : vector<1x8x1xi32>
    %cst_50 = arith.constant 1.000000e+00 : f32
    %272 = vector.broadcast %cst_50 : f32 to vector<1x8x1xf32>
    %273 = arith.subf %269, %272 : vector<1x8x1xf32>
    %274 = arith.select %271, %273, %269 : vector<1x8x1xi1>, vector<1x8x1xf32>
    %275 = vector.broadcast %274 : vector<1x8x1xf32> to vector<1x8x64xf32>
    %276 = vector.broadcast %268 : vector<1x1x64xf32> to vector<1x8x64xf32>
    %277 = arith.mulf %275, %276 : vector<1x8x64xf32>
    %278 = arith.subf %262, %277 : vector<1x8x64xf32>
    %279 = vector.extract_strided_slice %278 {offsets = [0, 7, 15], sizes = [1, 1, 1], strides = [1, 1, 1]} : vector<1x8x64xf32> to vector<1x1x1xf32>
    %280 = vector.extract_strided_slice %278 {offsets = [0, 7, 0], sizes = [1, 1, 64], strides = [1, 1, 1]} : vector<1x8x64xf32> to vector<1x1x64xf32>
    %cst_51 = arith.constant 1.000000e+00 : f32
    %281 = vector.broadcast %cst_51 : f32 to vector<1x1x1xf32>
    %282 = arith.divf %281, %279 : vector<1x1x1xf32>
    %283 = vector.broadcast %282 : vector<1x1x1xf32> to vector<1x1x64xf32>
    %284 = arith.mulf %280, %283 : vector<1x1x64xf32>
    %285 = vector.extract_strided_slice %278 {offsets = [0, 0, 15], sizes = [1, 8, 1], strides = [1, 1, 1]} : vector<1x8x64xf32> to vector<1x8x1xf32>
    %c7_i32_52 = arith.constant 7 : i32
    %286 = vector.broadcast %c7_i32_52 : i32 to vector<1x8x1xi32>
    %287 = arith.cmpi eq, %25, %286 : vector<1x8x1xi32>
    %cst_53 = arith.constant 1.000000e+00 : f32
    %288 = vector.broadcast %cst_53 : f32 to vector<1x8x1xf32>
    %289 = arith.subf %285, %288 : vector<1x8x1xf32>
    %290 = arith.select %287, %289, %285 : vector<1x8x1xi1>, vector<1x8x1xf32>
    %291 = vector.broadcast %290 : vector<1x8x1xf32> to vector<1x8x64xf32>
    %292 = vector.broadcast %284 : vector<1x1x64xf32> to vector<1x8x64xf32>
    %293 = arith.mulf %291, %292 : vector<1x8x64xf32>
    %294 = arith.subf %278, %293 : vector<1x8x64xf32>
    %295 = vector.extract_strided_slice %165 {offsets = [0, 0, 8], sizes = [1, 32, 8], strides = [1, 1, 1]} : vector<1x32x64xf32> to vector<1x32x8xf32>
    %c8_i32 = arith.constant 8 : i32
    %296 = vector.broadcast %c8_i32 : i32 to vector<1x32x8xi32>
    %297 = arith.addi %296, %27 : vector<1x32x8xi32>
    %298 = arith.cmpi eq, %26, %297 : vector<1x32x8xi32>
    %cst_54 = arith.constant 1.000000e+00 : f32
    %299 = vector.broadcast %cst_54 : f32 to vector<1x32x8xf32>
    %300 = arith.subf %295, %299 : vector<1x32x8xf32>
    %301 = arith.select %298, %300, %295 : vector<1x32x8xi1>, vector<1x32x8xf32>
    "tpu.trace_start"() <{level = 10 : i32, message = "bdn,bnw->bdw"}> : () -> ()
    %cst_55 = arith.constant dense<0.000000e+00> : vector<1x32x64xf32>
    %302 = tpu.matmul %301, %294, %cst_55 {dimension_numbers = #tpu.dot_dimension_numbers<[2], [1], [1], [2], [0, 0, 0, 1, 1, 2], [0], [0]>} : vector<1x32x8xf32>, vector<1x8x64xf32>, vector<1x32x64xf32> -> vector<1x32x64xf32>
    "tpu.trace_stop"() : () -> ()
    %303 = arith.subf %165, %302 : vector<1x32x64xf32>
    %304 = vector.extract_strided_slice %303 {offsets = [0, 16, 0], sizes = [1, 8, 64], strides = [1, 1, 1]} : vector<1x32x64xf32> to vector<1x8x64xf32>
    %305 = vector.extract_strided_slice %304 {offsets = [0, 0, 16], sizes = [1, 1, 1], strides = [1, 1, 1]} : vector<1x8x64xf32> to vector<1x1x1xf32>
    %306 = vector.extract_strided_slice %304 {offsets = [0, 0, 0], sizes = [1, 1, 64], strides = [1, 1, 1]} : vector<1x8x64xf32> to vector<1x1x64xf32>
    %cst_56 = arith.constant 1.000000e+00 : f32
    %307 = vector.broadcast %cst_56 : f32 to vector<1x1x1xf32>
    %308 = arith.divf %307, %305 : vector<1x1x1xf32>
    %309 = vector.broadcast %308 : vector<1x1x1xf32> to vector<1x1x64xf32>
    %310 = arith.mulf %306, %309 : vector<1x1x64xf32>
    %311 = vector.extract_strided_slice %304 {offsets = [0, 0, 16], sizes = [1, 8, 1], strides = [1, 1, 1]} : vector<1x8x64xf32> to vector<1x8x1xf32>
    %c0_i32_57 = arith.constant 0 : i32
    %312 = vector.broadcast %c0_i32_57 : i32 to vector<1x8x1xi32>
    %313 = arith.cmpi eq, %25, %312 : vector<1x8x1xi32>
    %cst_58 = arith.constant 1.000000e+00 : f32
    %314 = vector.broadcast %cst_58 : f32 to vector<1x8x1xf32>
    %315 = arith.subf %311, %314 : vector<1x8x1xf32>
    %316 = arith.select %313, %315, %311 : vector<1x8x1xi1>, vector<1x8x1xf32>
    %317 = vector.broadcast %316 : vector<1x8x1xf32> to vector<1x8x64xf32>
    %318 = vector.broadcast %310 : vector<1x1x64xf32> to vector<1x8x64xf32>
    %319 = arith.mulf %317, %318 : vector<1x8x64xf32>
    %320 = arith.subf %304, %319 : vector<1x8x64xf32>
    %321 = vector.extract_strided_slice %320 {offsets = [0, 1, 17], sizes = [1, 1, 1], strides = [1, 1, 1]} : vector<1x8x64xf32> to vector<1x1x1xf32>
    %322 = vector.extract_strided_slice %320 {offsets = [0, 1, 0], sizes = [1, 1, 64], strides = [1, 1, 1]} : vector<1x8x64xf32> to vector<1x1x64xf32>
    %cst_59 = arith.constant 1.000000e+00 : f32
    %323 = vector.broadcast %cst_59 : f32 to vector<1x1x1xf32>
    %324 = arith.divf %323, %321 : vector<1x1x1xf32>
    %325 = vector.broadcast %324 : vector<1x1x1xf32> to vector<1x1x64xf32>
    %326 = arith.mulf %322, %325 : vector<1x1x64xf32>
    %327 = vector.extract_strided_slice %320 {offsets = [0, 0, 17], sizes = [1, 8, 1], strides = [1, 1, 1]} : vector<1x8x64xf32> to vector<1x8x1xf32>
    %c1_i32_60 = arith.constant 1 : i32
    %328 = vector.broadcast %c1_i32_60 : i32 to vector<1x8x1xi32>
    %329 = arith.cmpi eq, %25, %328 : vector<1x8x1xi32>
    %cst_61 = arith.constant 1.000000e+00 : f32
    %330 = vector.broadcast %cst_61 : f32 to vector<1x8x1xf32>
    %331 = arith.subf %327, %330 : vector<1x8x1xf32>
    %332 = arith.select %329, %331, %327 : vector<1x8x1xi1>, vector<1x8x1xf32>
    %333 = vector.broadcast %332 : vector<1x8x1xf32> to vector<1x8x64xf32>
    %334 = vector.broadcast %326 : vector<1x1x64xf32> to vector<1x8x64xf32>
    %335 = arith.mulf %333, %334 : vector<1x8x64xf32>
    %336 = arith.subf %320, %335 : vector<1x8x64xf32>
    %337 = vector.extract_strided_slice %336 {offsets = [0, 2, 18], sizes = [1, 1, 1], strides = [1, 1, 1]} : vector<1x8x64xf32> to vector<1x1x1xf32>
    %338 = vector.extract_strided_slice %336 {offsets = [0, 2, 0], sizes = [1, 1, 64], strides = [1, 1, 1]} : vector<1x8x64xf32> to vector<1x1x64xf32>
    %cst_62 = arith.constant 1.000000e+00 : f32
    %339 = vector.broadcast %cst_62 : f32 to vector<1x1x1xf32>
    %340 = arith.divf %339, %337 : vector<1x1x1xf32>
    %341 = vector.broadcast %340 : vector<1x1x1xf32> to vector<1x1x64xf32>
    %342 = arith.mulf %338, %341 : vector<1x1x64xf32>
    %343 = vector.extract_strided_slice %336 {offsets = [0, 0, 18], sizes = [1, 8, 1], strides = [1, 1, 1]} : vector<1x8x64xf32> to vector<1x8x1xf32>
    %c2_i32_63 = arith.constant 2 : i32
    %344 = vector.broadcast %c2_i32_63 : i32 to vector<1x8x1xi32>
    %345 = arith.cmpi eq, %25, %344 : vector<1x8x1xi32>
    %cst_64 = arith.constant 1.000000e+00 : f32
    %346 = vector.broadcast %cst_64 : f32 to vector<1x8x1xf32>
    %347 = arith.subf %343, %346 : vector<1x8x1xf32>
    %348 = arith.select %345, %347, %343 : vector<1x8x1xi1>, vector<1x8x1xf32>
    %349 = vector.broadcast %348 : vector<1x8x1xf32> to vector<1x8x64xf32>
    %350 = vector.broadcast %342 : vector<1x1x64xf32> to vector<1x8x64xf32>
    %351 = arith.mulf %349, %350 : vector<1x8x64xf32>
    %352 = arith.subf %336, %351 : vector<1x8x64xf32>
    %353 = vector.extract_strided_slice %352 {offsets = [0, 3, 19], sizes = [1, 1, 1], strides = [1, 1, 1]} : vector<1x8x64xf32> to vector<1x1x1xf32>
    %354 = vector.extract_strided_slice %352 {offsets = [0, 3, 0], sizes = [1, 1, 64], strides = [1, 1, 1]} : vector<1x8x64xf32> to vector<1x1x64xf32>
    %cst_65 = arith.constant 1.000000e+00 : f32
    %355 = vector.broadcast %cst_65 : f32 to vector<1x1x1xf32>
    %356 = arith.divf %355, %353 : vector<1x1x1xf32>
    %357 = vector.broadcast %356 : vector<1x1x1xf32> to vector<1x1x64xf32>
    %358 = arith.mulf %354, %357 : vector<1x1x64xf32>
    %359 = vector.extract_strided_slice %352 {offsets = [0, 0, 19], sizes = [1, 8, 1], strides = [1, 1, 1]} : vector<1x8x64xf32> to vector<1x8x1xf32>
    %c3_i32_66 = arith.constant 3 : i32
    %360 = vector.broadcast %c3_i32_66 : i32 to vector<1x8x1xi32>
    %361 = arith.cmpi eq, %25, %360 : vector<1x8x1xi32>
    %cst_67 = arith.constant 1.000000e+00 : f32
    %362 = vector.broadcast %cst_67 : f32 to vector<1x8x1xf32>
    %363 = arith.subf %359, %362 : vector<1x8x1xf32>
    %364 = arith.select %361, %363, %359 : vector<1x8x1xi1>, vector<1x8x1xf32>
    %365 = vector.broadcast %364 : vector<1x8x1xf32> to vector<1x8x64xf32>
    %366 = vector.broadcast %358 : vector<1x1x64xf32> to vector<1x8x64xf32>
    %367 = arith.mulf %365, %366 : vector<1x8x64xf32>
    %368 = arith.subf %352, %367 : vector<1x8x64xf32>
    %369 = vector.extract_strided_slice %368 {offsets = [0, 4, 20], sizes = [1, 1, 1], strides = [1, 1, 1]} : vector<1x8x64xf32> to vector<1x1x1xf32>
    %370 = vector.extract_strided_slice %368 {offsets = [0, 4, 0], sizes = [1, 1, 64], strides = [1, 1, 1]} : vector<1x8x64xf32> to vector<1x1x64xf32>
    %cst_68 = arith.constant 1.000000e+00 : f32
    %371 = vector.broadcast %cst_68 : f32 to vector<1x1x1xf32>
    %372 = arith.divf %371, %369 : vector<1x1x1xf32>
    %373 = vector.broadcast %372 : vector<1x1x1xf32> to vector<1x1x64xf32>
    %374 = arith.mulf %370, %373 : vector<1x1x64xf32>
    %375 = vector.extract_strided_slice %368 {offsets = [0, 0, 20], sizes = [1, 8, 1], strides = [1, 1, 1]} : vector<1x8x64xf32> to vector<1x8x1xf32>
    %c4_i32_69 = arith.constant 4 : i32
    %376 = vector.broadcast %c4_i32_69 : i32 to vector<1x8x1xi32>
    %377 = arith.cmpi eq, %25, %376 : vector<1x8x1xi32>
    %cst_70 = arith.constant 1.000000e+00 : f32
    %378 = vector.broadcast %cst_70 : f32 to vector<1x8x1xf32>
    %379 = arith.subf %375, %378 : vector<1x8x1xf32>
    %380 = arith.select %377, %379, %375 : vector<1x8x1xi1>, vector<1x8x1xf32>
    %381 = vector.broadcast %380 : vector<1x8x1xf32> to vector<1x8x64xf32>
    %382 = vector.broadcast %374 : vector<1x1x64xf32> to vector<1x8x64xf32>
    %383 = arith.mulf %381, %382 : vector<1x8x64xf32>
    %384 = arith.subf %368, %383 : vector<1x8x64xf32>
    %385 = vector.extract_strided_slice %384 {offsets = [0, 5, 21], sizes = [1, 1, 1], strides = [1, 1, 1]} : vector<1x8x64xf32> to vector<1x1x1xf32>
    %386 = vector.extract_strided_slice %384 {offsets = [0, 5, 0], sizes = [1, 1, 64], strides = [1, 1, 1]} : vector<1x8x64xf32> to vector<1x1x64xf32>
    %cst_71 = arith.constant 1.000000e+00 : f32
    %387 = vector.broadcast %cst_71 : f32 to vector<1x1x1xf32>
    %388 = arith.divf %387, %385 : vector<1x1x1xf32>
    %389 = vector.broadcast %388 : vector<1x1x1xf32> to vector<1x1x64xf32>
    %390 = arith.mulf %386, %389 : vector<1x1x64xf32>
    %391 = vector.extract_strided_slice %384 {offsets = [0, 0, 21], sizes = [1, 8, 1], strides = [1, 1, 1]} : vector<1x8x64xf32> to vector<1x8x1xf32>
    %c5_i32_72 = arith.constant 5 : i32
    %392 = vector.broadcast %c5_i32_72 : i32 to vector<1x8x1xi32>
    %393 = arith.cmpi eq, %25, %392 : vector<1x8x1xi32>
    %cst_73 = arith.constant 1.000000e+00 : f32
    %394 = vector.broadcast %cst_73 : f32 to vector<1x8x1xf32>
    %395 = arith.subf %391, %394 : vector<1x8x1xf32>
    %396 = arith.select %393, %395, %391 : vector<1x8x1xi1>, vector<1x8x1xf32>
    %397 = vector.broadcast %396 : vector<1x8x1xf32> to vector<1x8x64xf32>
    %398 = vector.broadcast %390 : vector<1x1x64xf32> to vector<1x8x64xf32>
    %399 = arith.mulf %397, %398 : vector<1x8x64xf32>
    %400 = arith.subf %384, %399 : vector<1x8x64xf32>
    %401 = vector.extract_strided_slice %400 {offsets = [0, 6, 22], sizes = [1, 1, 1], strides = [1, 1, 1]} : vector<1x8x64xf32> to vector<1x1x1xf32>
    %402 = vector.extract_strided_slice %400 {offsets = [0, 6, 0], sizes = [1, 1, 64], strides = [1, 1, 1]} : vector<1x8x64xf32> to vector<1x1x64xf32>
    %cst_74 = arith.constant 1.000000e+00 : f32
    %403 = vector.broadcast %cst_74 : f32 to vector<1x1x1xf32>
    %404 = arith.divf %403, %401 : vector<1x1x1xf32>
    %405 = vector.broadcast %404 : vector<1x1x1xf32> to vector<1x1x64xf32>
    %406 = arith.mulf %402, %405 : vector<1x1x64xf32>
    %407 = vector.extract_strided_slice %400 {offsets = [0, 0, 22], sizes = [1, 8, 1], strides = [1, 1, 1]} : vector<1x8x64xf32> to vector<1x8x1xf32>
    %c6_i32_75 = arith.constant 6 : i32
    %408 = vector.broadcast %c6_i32_75 : i32 to vector<1x8x1xi32>
    %409 = arith.cmpi eq, %25, %408 : vector<1x8x1xi32>
    %cst_76 = arith.constant 1.000000e+00 : f32
    %410 = vector.broadcast %cst_76 : f32 to vector<1x8x1xf32>
    %411 = arith.subf %407, %410 : vector<1x8x1xf32>
    %412 = arith.select %409, %411, %407 : vector<1x8x1xi1>, vector<1x8x1xf32>
    %413 = vector.broadcast %412 : vector<1x8x1xf32> to vector<1x8x64xf32>
    %414 = vector.broadcast %406 : vector<1x1x64xf32> to vector<1x8x64xf32>
    %415 = arith.mulf %413, %414 : vector<1x8x64xf32>
    %416 = arith.subf %400, %415 : vector<1x8x64xf32>
    %417 = vector.extract_strided_slice %416 {offsets = [0, 7, 23], sizes = [1, 1, 1], strides = [1, 1, 1]} : vector<1x8x64xf32> to vector<1x1x1xf32>
    %418 = vector.extract_strided_slice %416 {offsets = [0, 7, 0], sizes = [1, 1, 64], strides = [1, 1, 1]} : vector<1x8x64xf32> to vector<1x1x64xf32>
    %cst_77 = arith.constant 1.000000e+00 : f32
    %419 = vector.broadcast %cst_77 : f32 to vector<1x1x1xf32>
    %420 = arith.divf %419, %417 : vector<1x1x1xf32>
    %421 = vector.broadcast %420 : vector<1x1x1xf32> to vector<1x1x64xf32>
    %422 = arith.mulf %418, %421 : vector<1x1x64xf32>
    %423 = vector.extract_strided_slice %416 {offsets = [0, 0, 23], sizes = [1, 8, 1], strides = [1, 1, 1]} : vector<1x8x64xf32> to vector<1x8x1xf32>
    %c7_i32_78 = arith.constant 7 : i32
    %424 = vector.broadcast %c7_i32_78 : i32 to vector<1x8x1xi32>
    %425 = arith.cmpi eq, %25, %424 : vector<1x8x1xi32>
    %cst_79 = arith.constant 1.000000e+00 : f32
    %426 = vector.broadcast %cst_79 : f32 to vector<1x8x1xf32>
    %427 = arith.subf %423, %426 : vector<1x8x1xf32>
    %428 = arith.select %425, %427, %423 : vector<1x8x1xi1>, vector<1x8x1xf32>
    %429 = vector.broadcast %428 : vector<1x8x1xf32> to vector<1x8x64xf32>
    %430 = vector.broadcast %422 : vector<1x1x64xf32> to vector<1x8x64xf32>
    %431 = arith.mulf %429, %430 : vector<1x8x64xf32>
    %432 = arith.subf %416, %431 : vector<1x8x64xf32>
    %433 = vector.extract_strided_slice %303 {offsets = [0, 0, 16], sizes = [1, 32, 8], strides = [1, 1, 1]} : vector<1x32x64xf32> to vector<1x32x8xf32>
    %c16_i32 = arith.constant 16 : i32
    %434 = vector.broadcast %c16_i32 : i32 to vector<1x32x8xi32>
    %435 = arith.addi %434, %27 : vector<1x32x8xi32>
    %436 = arith.cmpi eq, %26, %435 : vector<1x32x8xi32>
    %cst_80 = arith.constant 1.000000e+00 : f32
    %437 = vector.broadcast %cst_80 : f32 to vector<1x32x8xf32>
    %438 = arith.subf %433, %437 : vector<1x32x8xf32>
    %439 = arith.select %436, %438, %433 : vector<1x32x8xi1>, vector<1x32x8xf32>
    "tpu.trace_start"() <{level = 10 : i32, message = "bdn,bnw->bdw"}> : () -> ()
    %cst_81 = arith.constant dense<0.000000e+00> : vector<1x32x64xf32>
    %440 = tpu.matmul %439, %432, %cst_81 {dimension_numbers = #tpu.dot_dimension_numbers<[2], [1], [1], [2], [0, 0, 0, 1, 1, 2], [0], [0]>} : vector<1x32x8xf32>, vector<1x8x64xf32>, vector<1x32x64xf32> -> vector<1x32x64xf32>
    "tpu.trace_stop"() : () -> ()
    %441 = arith.subf %303, %440 : vector<1x32x64xf32>
    %442 = vector.extract_strided_slice %441 {offsets = [0, 24, 0], sizes = [1, 8, 64], strides = [1, 1, 1]} : vector<1x32x64xf32> to vector<1x8x64xf32>
    %443 = vector.extract_strided_slice %442 {offsets = [0, 0, 24], sizes = [1, 1, 1], strides = [1, 1, 1]} : vector<1x8x64xf32> to vector<1x1x1xf32>
    %444 = vector.extract_strided_slice %442 {offsets = [0, 0, 0], sizes = [1, 1, 64], strides = [1, 1, 1]} : vector<1x8x64xf32> to vector<1x1x64xf32>
    %cst_82 = arith.constant 1.000000e+00 : f32
    %445 = vector.broadcast %cst_82 : f32 to vector<1x1x1xf32>
    %446 = arith.divf %445, %443 : vector<1x1x1xf32>
    %447 = vector.broadcast %446 : vector<1x1x1xf32> to vector<1x1x64xf32>
    %448 = arith.mulf %444, %447 : vector<1x1x64xf32>
    %449 = vector.extract_strided_slice %442 {offsets = [0, 0, 24], sizes = [1, 8, 1], strides = [1, 1, 1]} : vector<1x8x64xf32> to vector<1x8x1xf32>
    %c0_i32_83 = arith.constant 0 : i32
    %450 = vector.broadcast %c0_i32_83 : i32 to vector<1x8x1xi32>
    %451 = arith.cmpi eq, %25, %450 : vector<1x8x1xi32>
    %cst_84 = arith.constant 1.000000e+00 : f32
    %452 = vector.broadcast %cst_84 : f32 to vector<1x8x1xf32>
    %453 = arith.subf %449, %452 : vector<1x8x1xf32>
    %454 = arith.select %451, %453, %449 : vector<1x8x1xi1>, vector<1x8x1xf32>
    %455 = vector.broadcast %454 : vector<1x8x1xf32> to vector<1x8x64xf32>
    %456 = vector.broadcast %448 : vector<1x1x64xf32> to vector<1x8x64xf32>
    %457 = arith.mulf %455, %456 : vector<1x8x64xf32>
    %458 = arith.subf %442, %457 : vector<1x8x64xf32>
    %459 = vector.extract_strided_slice %458 {offsets = [0, 1, 25], sizes = [1, 1, 1], strides = [1, 1, 1]} : vector<1x8x64xf32> to vector<1x1x1xf32>
    %460 = vector.extract_strided_slice %458 {offsets = [0, 1, 0], sizes = [1, 1, 64], strides = [1, 1, 1]} : vector<1x8x64xf32> to vector<1x1x64xf32>
    %cst_85 = arith.constant 1.000000e+00 : f32
    %461 = vector.broadcast %cst_85 : f32 to vector<1x1x1xf32>
    %462 = arith.divf %461, %459 : vector<1x1x1xf32>
    %463 = vector.broadcast %462 : vector<1x1x1xf32> to vector<1x1x64xf32>
    %464 = arith.mulf %460, %463 : vector<1x1x64xf32>
    %465 = vector.extract_strided_slice %458 {offsets = [0, 0, 25], sizes = [1, 8, 1], strides = [1, 1, 1]} : vector<1x8x64xf32> to vector<1x8x1xf32>
    %c1_i32_86 = arith.constant 1 : i32
    %466 = vector.broadcast %c1_i32_86 : i32 to vector<1x8x1xi32>
    %467 = arith.cmpi eq, %25, %466 : vector<1x8x1xi32>
    %cst_87 = arith.constant 1.000000e+00 : f32
    %468 = vector.broadcast %cst_87 : f32 to vector<1x8x1xf32>
    %469 = arith.subf %465, %468 : vector<1x8x1xf32>
    %470 = arith.select %467, %469, %465 : vector<1x8x1xi1>, vector<1x8x1xf32>
    %471 = vector.broadcast %470 : vector<1x8x1xf32> to vector<1x8x64xf32>
    %472 = vector.broadcast %464 : vector<1x1x64xf32> to vector<1x8x64xf32>
    %473 = arith.mulf %471, %472 : vector<1x8x64xf32>
    %474 = arith.subf %458, %473 : vector<1x8x64xf32>
    %475 = vector.extract_strided_slice %474 {offsets = [0, 2, 26], sizes = [1, 1, 1], strides = [1, 1, 1]} : vector<1x8x64xf32> to vector<1x1x1xf32>
    %476 = vector.extract_strided_slice %474 {offsets = [0, 2, 0], sizes = [1, 1, 64], strides = [1, 1, 1]} : vector<1x8x64xf32> to vector<1x1x64xf32>
    %cst_88 = arith.constant 1.000000e+00 : f32
    %477 = vector.broadcast %cst_88 : f32 to vector<1x1x1xf32>
    %478 = arith.divf %477, %475 : vector<1x1x1xf32>
    %479 = vector.broadcast %478 : vector<1x1x1xf32> to vector<1x1x64xf32>
    %480 = arith.mulf %476, %479 : vector<1x1x64xf32>
    %481 = vector.extract_strided_slice %474 {offsets = [0, 0, 26], sizes = [1, 8, 1], strides = [1, 1, 1]} : vector<1x8x64xf32> to vector<1x8x1xf32>
    %c2_i32_89 = arith.constant 2 : i32
    %482 = vector.broadcast %c2_i32_89 : i32 to vector<1x8x1xi32>
    %483 = arith.cmpi eq, %25, %482 : vector<1x8x1xi32>
    %cst_90 = arith.constant 1.000000e+00 : f32
    %484 = vector.broadcast %cst_90 : f32 to vector<1x8x1xf32>
    %485 = arith.subf %481, %484 : vector<1x8x1xf32>
    %486 = arith.select %483, %485, %481 : vector<1x8x1xi1>, vector<1x8x1xf32>
    %487 = vector.broadcast %486 : vector<1x8x1xf32> to vector<1x8x64xf32>
    %488 = vector.broadcast %480 : vector<1x1x64xf32> to vector<1x8x64xf32>
    %489 = arith.mulf %487, %488 : vector<1x8x64xf32>
    %490 = arith.subf %474, %489 : vector<1x8x64xf32>
    %491 = vector.extract_strided_slice %490 {offsets = [0, 3, 27], sizes = [1, 1, 1], strides = [1, 1, 1]} : vector<1x8x64xf32> to vector<1x1x1xf32>
    %492 = vector.extract_strided_slice %490 {offsets = [0, 3, 0], sizes = [1, 1, 64], strides = [1, 1, 1]} : vector<1x8x64xf32> to vector<1x1x64xf32>
    %cst_91 = arith.constant 1.000000e+00 : f32
    %493 = vector.broadcast %cst_91 : f32 to vector<1x1x1xf32>
    %494 = arith.divf %493, %491 : vector<1x1x1xf32>
    %495 = vector.broadcast %494 : vector<1x1x1xf32> to vector<1x1x64xf32>
    %496 = arith.mulf %492, %495 : vector<1x1x64xf32>
    %497 = vector.extract_strided_slice %490 {offsets = [0, 0, 27], sizes = [1, 8, 1], strides = [1, 1, 1]} : vector<1x8x64xf32> to vector<1x8x1xf32>
    %c3_i32_92 = arith.constant 3 : i32
    %498 = vector.broadcast %c3_i32_92 : i32 to vector<1x8x1xi32>
    %499 = arith.cmpi eq, %25, %498 : vector<1x8x1xi32>
    %cst_93 = arith.constant 1.000000e+00 : f32
    %500 = vector.broadcast %cst_93 : f32 to vector<1x8x1xf32>
    %501 = arith.subf %497, %500 : vector<1x8x1xf32>
    %502 = arith.select %499, %501, %497 : vector<1x8x1xi1>, vector<1x8x1xf32>
    %503 = vector.broadcast %502 : vector<1x8x1xf32> to vector<1x8x64xf32>
    %504 = vector.broadcast %496 : vector<1x1x64xf32> to vector<1x8x64xf32>
    %505 = arith.mulf %503, %504 : vector<1x8x64xf32>
    %506 = arith.subf %490, %505 : vector<1x8x64xf32>
    %507 = vector.extract_strided_slice %506 {offsets = [0, 4, 28], sizes = [1, 1, 1], strides = [1, 1, 1]} : vector<1x8x64xf32> to vector<1x1x1xf32>
    %508 = vector.extract_strided_slice %506 {offsets = [0, 4, 0], sizes = [1, 1, 64], strides = [1, 1, 1]} : vector<1x8x64xf32> to vector<1x1x64xf32>
    %cst_94 = arith.constant 1.000000e+00 : f32
    %509 = vector.broadcast %cst_94 : f32 to vector<1x1x1xf32>
    %510 = arith.divf %509, %507 : vector<1x1x1xf32>
    %511 = vector.broadcast %510 : vector<1x1x1xf32> to vector<1x1x64xf32>
    %512 = arith.mulf %508, %511 : vector<1x1x64xf32>
    %513 = vector.extract_strided_slice %506 {offsets = [0, 0, 28], sizes = [1, 8, 1], strides = [1, 1, 1]} : vector<1x8x64xf32> to vector<1x8x1xf32>
    %c4_i32_95 = arith.constant 4 : i32
    %514 = vector.broadcast %c4_i32_95 : i32 to vector<1x8x1xi32>
    %515 = arith.cmpi eq, %25, %514 : vector<1x8x1xi32>
    %cst_96 = arith.constant 1.000000e+00 : f32
    %516 = vector.broadcast %cst_96 : f32 to vector<1x8x1xf32>
    %517 = arith.subf %513, %516 : vector<1x8x1xf32>
    %518 = arith.select %515, %517, %513 : vector<1x8x1xi1>, vector<1x8x1xf32>
    %519 = vector.broadcast %518 : vector<1x8x1xf32> to vector<1x8x64xf32>
    %520 = vector.broadcast %512 : vector<1x1x64xf32> to vector<1x8x64xf32>
    %521 = arith.mulf %519, %520 : vector<1x8x64xf32>
    %522 = arith.subf %506, %521 : vector<1x8x64xf32>
    %523 = vector.extract_strided_slice %522 {offsets = [0, 5, 29], sizes = [1, 1, 1], strides = [1, 1, 1]} : vector<1x8x64xf32> to vector<1x1x1xf32>
    %524 = vector.extract_strided_slice %522 {offsets = [0, 5, 0], sizes = [1, 1, 64], strides = [1, 1, 1]} : vector<1x8x64xf32> to vector<1x1x64xf32>
    %cst_97 = arith.constant 1.000000e+00 : f32
    %525 = vector.broadcast %cst_97 : f32 to vector<1x1x1xf32>
    %526 = arith.divf %525, %523 : vector<1x1x1xf32>
    %527 = vector.broadcast %526 : vector<1x1x1xf32> to vector<1x1x64xf32>
    %528 = arith.mulf %524, %527 : vector<1x1x64xf32>
    %529 = vector.extract_strided_slice %522 {offsets = [0, 0, 29], sizes = [1, 8, 1], strides = [1, 1, 1]} : vector<1x8x64xf32> to vector<1x8x1xf32>
    %c5_i32_98 = arith.constant 5 : i32
    %530 = vector.broadcast %c5_i32_98 : i32 to vector<1x8x1xi32>
    %531 = arith.cmpi eq, %25, %530 : vector<1x8x1xi32>
    %cst_99 = arith.constant 1.000000e+00 : f32
    %532 = vector.broadcast %cst_99 : f32 to vector<1x8x1xf32>
    %533 = arith.subf %529, %532 : vector<1x8x1xf32>
    %534 = arith.select %531, %533, %529 : vector<1x8x1xi1>, vector<1x8x1xf32>
    %535 = vector.broadcast %534 : vector<1x8x1xf32> to vector<1x8x64xf32>
    %536 = vector.broadcast %528 : vector<1x1x64xf32> to vector<1x8x64xf32>
    %537 = arith.mulf %535, %536 : vector<1x8x64xf32>
    %538 = arith.subf %522, %537 : vector<1x8x64xf32>
    %539 = vector.extract_strided_slice %538 {offsets = [0, 6, 30], sizes = [1, 1, 1], strides = [1, 1, 1]} : vector<1x8x64xf32> to vector<1x1x1xf32>
    %540 = vector.extract_strided_slice %538 {offsets = [0, 6, 0], sizes = [1, 1, 64], strides = [1, 1, 1]} : vector<1x8x64xf32> to vector<1x1x64xf32>
    %cst_100 = arith.constant 1.000000e+00 : f32
    %541 = vector.broadcast %cst_100 : f32 to vector<1x1x1xf32>
    %542 = arith.divf %541, %539 : vector<1x1x1xf32>
    %543 = vector.broadcast %542 : vector<1x1x1xf32> to vector<1x1x64xf32>
    %544 = arith.mulf %540, %543 : vector<1x1x64xf32>
    %545 = vector.extract_strided_slice %538 {offsets = [0, 0, 30], sizes = [1, 8, 1], strides = [1, 1, 1]} : vector<1x8x64xf32> to vector<1x8x1xf32>
    %c6_i32_101 = arith.constant 6 : i32
    %546 = vector.broadcast %c6_i32_101 : i32 to vector<1x8x1xi32>
    %547 = arith.cmpi eq, %25, %546 : vector<1x8x1xi32>
    %cst_102 = arith.constant 1.000000e+00 : f32
    %548 = vector.broadcast %cst_102 : f32 to vector<1x8x1xf32>
    %549 = arith.subf %545, %548 : vector<1x8x1xf32>
    %550 = arith.select %547, %549, %545 : vector<1x8x1xi1>, vector<1x8x1xf32>
    %551 = vector.broadcast %550 : vector<1x8x1xf32> to vector<1x8x64xf32>
    %552 = vector.broadcast %544 : vector<1x1x64xf32> to vector<1x8x64xf32>
    %553 = arith.mulf %551, %552 : vector<1x8x64xf32>
    %554 = arith.subf %538, %553 : vector<1x8x64xf32>
    %555 = vector.extract_strided_slice %554 {offsets = [0, 7, 31], sizes = [1, 1, 1], strides = [1, 1, 1]} : vector<1x8x64xf32> to vector<1x1x1xf32>
    %556 = vector.extract_strided_slice %554 {offsets = [0, 7, 0], sizes = [1, 1, 64], strides = [1, 1, 1]} : vector<1x8x64xf32> to vector<1x1x64xf32>
    %cst_103 = arith.constant 1.000000e+00 : f32
    %557 = vector.broadcast %cst_103 : f32 to vector<1x1x1xf32>
    %558 = arith.divf %557, %555 : vector<1x1x1xf32>
    %559 = vector.broadcast %558 : vector<1x1x1xf32> to vector<1x1x64xf32>
    %560 = arith.mulf %556, %559 : vector<1x1x64xf32>
    %561 = vector.extract_strided_slice %554 {offsets = [0, 0, 31], sizes = [1, 8, 1], strides = [1, 1, 1]} : vector<1x8x64xf32> to vector<1x8x1xf32>
    %c7_i32_104 = arith.constant 7 : i32
    %562 = vector.broadcast %c7_i32_104 : i32 to vector<1x8x1xi32>
    %563 = arith.cmpi eq, %25, %562 : vector<1x8x1xi32>
    %cst_105 = arith.constant 1.000000e+00 : f32
    %564 = vector.broadcast %cst_105 : f32 to vector<1x8x1xf32>
    %565 = arith.subf %561, %564 : vector<1x8x1xf32>
    %566 = arith.select %563, %565, %561 : vector<1x8x1xi1>, vector<1x8x1xf32>
    %567 = vector.broadcast %566 : vector<1x8x1xf32> to vector<1x8x64xf32>
    %568 = vector.broadcast %560 : vector<1x1x64xf32> to vector<1x8x64xf32>
    %569 = arith.mulf %567, %568 : vector<1x8x64xf32>
    %570 = arith.subf %554, %569 : vector<1x8x64xf32>
    %571 = vector.extract_strided_slice %441 {offsets = [0, 0, 24], sizes = [1, 32, 8], strides = [1, 1, 1]} : vector<1x32x64xf32> to vector<1x32x8xf32>
    %c24_i32 = arith.constant 24 : i32
    %572 = vector.broadcast %c24_i32 : i32 to vector<1x32x8xi32>
    %573 = arith.addi %572, %27 : vector<1x32x8xi32>
    %574 = arith.cmpi eq, %26, %573 : vector<1x32x8xi32>
    %cst_106 = arith.constant 1.000000e+00 : f32
    %575 = vector.broadcast %cst_106 : f32 to vector<1x32x8xf32>
    %576 = arith.subf %571, %575 : vector<1x32x8xf32>
    %577 = arith.select %574, %576, %571 : vector<1x32x8xi1>, vector<1x32x8xf32>
    "tpu.trace_start"() <{level = 10 : i32, message = "bdn,bnw->bdw"}> : () -> ()
    %cst_107 = arith.constant dense<0.000000e+00> : vector<1x32x64xf32>
    %578 = tpu.matmul %577, %570, %cst_107 {dimension_numbers = #tpu.dot_dimension_numbers<[2], [1], [1], [2], [0, 0, 0, 1, 1, 2], [0], [0]>} : vector<1x32x8xf32>, vector<1x8x64xf32>, vector<1x32x64xf32> -> vector<1x32x64xf32>
    "tpu.trace_stop"() : () -> ()
    %579 = arith.subf %441, %578 : vector<1x32x64xf32>
    %580 = vector.extract_strided_slice %579 {offsets = [0, 0, 32], sizes = [1, 32, 32], strides = [1, 1, 1]} : vector<1x32x64xf32> to vector<1x32x32xf32>
    %cst_108 = arith.constant dense<0xFF800000> : vector<1x32xf32>
    %581 = vector.multi_reduction <maximumf>, %580, %cst_108 [2] : vector<1x32x32xf32> to vector<1x32xf32>
    %582 = vector.shape_cast %581 : vector<1x32xf32> to vector<1x32x1xf32>
    %583 = vector.broadcast %582 : vector<1x32x1xf32> to vector<1x32x32xf32>
    %584 = arith.subf %580, %583 : vector<1x32x32xf32>
    %585 = math.exp %584 : vector<1x32x32xf32>
    %cst_109 = arith.constant dense<0.000000e+00> : vector<1x32xf32>
    %586 = vector.multi_reduction <add>, %585, %cst_109 [2] : vector<1x32x32xf32> to vector<1x32xf32>
    %587 = vector.shape_cast %586 : vector<1x32xf32> to vector<1x32x1xf32>
    %588 = tpu.reciprocal %587 : vector<1x32x1xf32> -> vector<1x32x1xf32>
    %589 = vector.broadcast %588 : vector<1x32x1xf32> to vector<1x32x32xf32>
    %590 = arith.mulf %585, %589 : vector<1x32x32xf32>
    %591 = arith.truncf %8 : vector<1x8x32xf32> to vector<1x8x32xbf16>
    %592 = arith.truncf %590 : vector<1x32x32xf32> to vector<1x32x32xbf16>
    "tpu.trace_start"() <{level = 10 : i32, message = "bfd,bde->bfe"}> : () -> ()
    %cst_110 = arith.constant dense<0.000000e+00> : vector<1x8x32xf32>
    %593 = tpu.matmul %591, %592, %cst_110 {dimension_numbers = #tpu.dot_dimension_numbers<[2], [1], [1], [2], [0, 0, 0, 1, 1, 2], [0], [0]>} : vector<1x8x32xbf16>, vector<1x32x32xbf16>, vector<1x8x32xf32> -> vector<1x8x32xf32>
    "tpu.trace_stop"() : () -> ()
    %c0_111 = arith.constant 0 : index
    %c0_112 = arith.constant 0 : index
    %c0_113 = arith.constant 0 : index
    %594 = vector.load %arg5[%c0_111, %c0_112, %c0_113] : memref<1x8x32xf32, #tpu.memory_space<vmem>>, vector<1x8x32xf32>
    tpu.vector_store %arg5[%c0_111, %c0_112, %c0_113], %593 {strides = array<i32>} : memref<1x8x32xf32, #tpu.memory_space<vmem>>, vector<1x8x32xf32>,
    return
  }
  func.func @transform_0(%arg0: i32) -> (i32, i32, i32) {
    %c0_i32 = arith.constant 0 : i32
    %c0_i32_0 = arith.constant 0 : i32
    %c0_i32_1 = arith.constant 0 : i32
    return %arg0, %c0_i32, %c0_i32_0 : i32, i32, i32
  }
  func.func @transform_1(%arg0: i32) -> (i32, i32) {
    %c0_i32 = arith.constant 0 : i32
    %c0_i32_0 = arith.constant 0 : i32
    %c0_i32_1 = arith.constant 0 : i32
    return %c0_i32, %c0_i32_0 : i32, i32
  }
  func.func @transform_2(%arg0: i32) -> (i32, i32) {
    %c0_i32 = arith.constant 0 : i32
    %c0_i32_0 = arith.constant 0 : i32
    %c0_i32_1 = arith.constant 0 : i32
    return %c0_i32, %c0_i32_0 : i32, i32
  }
  func.func @transform_3(%arg0: i32) -> (i32, i32) {
    %c0_i32 = arith.constant 0 : i32
    %c0_i32_0 = arith.constant 0 : i32
    %c0_i32_1 = arith.constant 0 : i32
    return %c0_i32, %c0_i32_0 : i32, i32
  }
  func.func @transform_4(%arg0: i32) -> (i32, i32, i32) {
    %c0_i32 = arith.constant 0 : i32
    %c0_i32_0 = arith.constant 0 : i32
    %c0_i32_1 = arith.constant 0 : i32
    return %arg0, %c0_i32, %c0_i32_0 : i32, i32, i32
  }
}

</mosaic_0001>

<bundles_post_ra>
// kernel: self_intention_pallas.1
= control target key start
LH: loop header
LB: loop body
LE: loop exit
PB: predicated region body
PF: predicated region fallthrough
CT: control target
= control target key end

     0   :  { %9 = vsyncpa [#allocation3], 0  ;;  %s2960_s0 = inlined_call_operand.vmem [shape: f32[2,8,32], index: 0, kind: input, shape index: {}]   ;;  %s2961_s1 = inlined_call_operand.vmem [shape: f32[32,96], index: 1, kind: input, shape index: {}]   ;;  %s2962_s2 = inlined_call_operand.vmem [shape: f32[1,96], index: 2, kind: input, shape index: {}]   ;;  %s2963_s3 = inlined_call_operand.vmem [shape: f32[1,32], index: 3, kind: input, shape index: {}]   ;;  %s2964_s4 = inlined_call_operand.hbm [shape: f32[2,8,32], index: 4, kind: output, shape index: {}]  }
   0x1   :  { %11 = vsyncpa [#allocation3 + $0x1], 0  ;;  %s2494_s15 = smov 0   ;;  %s2496_s16 = smov 0  }
   0x2   :  { %s2498_s17 = smov 0   ;;  %s2500_s18 = smov 0  }
   0x3 LB: > { %s2515_s19 = sadd.s32 4294967295, %s2425_s18   ;;  %s1956_s20 = sadd.s32 4294967294, %s2425_s18   ;;  %s2425_s18 = sphi %s2500_s18, %s2970_s18   ;;  %s2421_s17 = sphi %s2498_s17, %s2969_s17   ;;  %s2417_s16 = sphi %s2496_s16, %s2968_s16   ;;  %s2413_s15 = sphi %s2494_s15, %s2967_s15  }
   0x4   : > { %s2519_s21 = sadd.s32 1, %s2425_s18   ;;  %s113_s22 = sadd.s32 1, %s2421_s17 }
   0x5   : > { %s110_s23 = ssub.s32 %s2425_s18, %s2519_s21  ;;  %p123_p0 = scmp.ne.s32.totalorder %s2421_s17, %s2417_s16 }
   0x6   : > { %p111_p1 = scmp.eq.s32.totalorder %s110_s23, 0  ;;  %p124_p2 = scmp.eq.s32.totalorder %s2515_s19, 1 }
   0x7   : > { %p129_p3 = scmp.ne.s32.totalorder %s2417_s16, %s2413_s15  ;;  %p130_p4 = scmp.eq.s32.totalorder %s1956_s20, 1 }
   0x8   : > { %s2530_s24 = scalar_select %p111_p1, %s2421_s17, %s113_s22  }
   0x9   : > { %p2532_p5 = por %p124_p2, %p123_p0  ;;  %p2536_p6 = por %p130_p4, %p129_p3 }
   0xa   : > { %p1959_p7 = scmp.ge.s32.totalorder %s2425_s18, 1  ;;  %p164_p8 = scmp.lt.s32.totalorder %s2425_s18, 3 }
   0xc   : > { %p165_p9 = pnand %p1959_p7, %p164_p8 }
   0xd   : > { %v195_v0 = vld [vmem:[%s2961_s1] sm:$0xff] (!%p165_p9)  ;;  %v196_v1 = vld [vmem:[%s2961_s1 + $0x8] sm:$0xff] (!%p165_p9)  ;;  %v197_v2 = vld [vmem:[%s2961_s1 + $0x10] sm:$0xff] (!%p165_p9)  ;;  %v2427_v3 = vmov (!%p165_p9), 0.0|0.0   ;;  %vm2428_vm0 = vmmov (!%p165_p9), 0   ;;  %v2429_v6 = vmov (!%p165_p9), 0.0   ;;  %v280_v28 = vlaneseq (!%p165_p9) }
   0xe   : > { %168 = sbr.rel (%p165_p9) target bundleno = 7191 (0x1c17), region = 36  ;;  %2143 = vmatprep.subr.bf16.mxu0 (!%p165_p9), %v2427_v3  ;;  %v2144_v4 = vpack.c.bf16 (!%p165_p9), %v196_v1, %v195_v0  ;;  %v198_v5 = vld [vmem:[%s2961_s1 + $0x18] sm:$0xff] (!%p165_p9)  ;;  %2084 = vmatprep.mubr.msk.f32.mxu0 (!%p165_p9), %vm2428_vm0, %v2429_v6  ;;  %p189_p10 = scmp.lt.s32.totalorder (!%p165_p9), %s2515_s19, 1  ;;  %vm206_vm1 = vcmask (!%p165_p9), 261120   ;;  %v1962_v9 = vld [vmem:[%s2962_s2] ss:$0 sm:$0xff] (!%p165_p9) }
   0xf   : > { %v2147_v7 = vpack.c.bf16 (!%p165_p9), %v198_v5, %v197_v2  ;;  %s2430_s22 = smov (!%p165_p9), 96   ;;  %s2431_s23 = smov (!%p165_p9), 64   ;;  %vm338_vm2 = vcmask (!%p165_p9), 64512   ;;  %v2432_v21 = vmov (!%p165_p9), 0   ;;  %v2591_v29 = vand.u32 (!%p165_p9), 127, %v280_v28 }
  0x10   : > { %2145 = vmatpush3.bf16.msra.mxu0 (!%p165_p9), %v2144_v4  ;;  %2229 = vset.pattern.permute.xlu0 (!%p165_p9), %v2432_v21  ;;  %s2433_s27 = smov (!%p165_p9), 32   ;;  %v2593_v30 = vshrl.u32 (!%p165_p9), %v280_v28, 7  ;;  %v2598_v31 = vld [vmem:[%s2963_s3] ss:$0 sm:$0xff] (!%p165_p9)  ;;  %v2434_v40 = vmov (!%p165_p9), 1   ;;  %v2435_v51 = vmov (!%p165_p9), 2  }
  0x11   : > { %2146 = vmatprep.subr.bf16.mxu0 (!%p165_p9), %v2427_v3  ;;  %v2436_v62 = vmov (!%p165_p9), 3   ;;  %v2438_v28 = vmov (!%p165_p9), 5   ;;  %s2449_s30 = smov (!%p165_p9), 120   ;;  %s2458_s5 = smov (!%p165_p9), 112  }
  0x12   : > { %vm287_vm3 = vcmp.eq.s32.totalorder (!%p165_p9), %v2593_v30, %v2591_v29  ;;  %vm552_vm4 = vcmp.eq.s32.totalorder (!%p165_p9), %v2593_v30, 0  ;;  %v2615_v41 = vsub.s32 (!%p165_p9), 0, %v2593_v30  ;;  %vm574_vm5 = vcmp.eq.s32.totalorder (!%p165_p9), %v2593_v30, 1  ;;  %s2467_s6 = smov (!%p165_p9), 104   ;;  %s186_s7 = sand.u32 (!%p165_p9), 1, %s2417_s16  }
  0x13   : > { %v298_v32 = vsel (!%p165_p9), %vm287_vm3, %v2598_v31, 0.0  ;;  %v2624_v52 = vsub.s32 (!%p165_p9), 1, %v2593_v30  ;;  %vm596_vm6 = vcmp.eq.s32.totalorder (!%p165_p9), %v2593_v30, 2  ;;  %v2631_v63 = vsub.s32 (!%p165_p9), 2, %v2593_v30  ;;  %s1960_s8 = sshll.u32 (!%p165_p9), %s186_s7, 3  ;;  %s1884_s20 = scalar_lea.sflag (!%p165_p9), [#allocation3], %s186_s7 }
  0x14   : > { %2148 = vmatpush3.bf16.msra.mxu0 (!%p165_p9), %v2147_v7  ;;  %vm618_vm7 = vcmp.eq.s32.totalorder (!%p165_p9), %v2593_v30, 3  ;;  %vm640_vm8 = vcmp.eq.s32.totalorder (!%p165_p9), %v2593_v30, 4  ;;  %vm662_vm9 = vcmp.eq.s32.totalorder (!%p165_p9), %v2593_v30, 5  ;;  %vm684_vm10 = vcmp.eq.s32.totalorder (!%p165_p9), %v2593_v30, 6 }
  0x15   : > { %s190_s9 = scalar_select %p189_p10, %s2515_s19, 1  ;;  %vm706_vm11 = vcmp.eq.s32.totalorder %v2593_v30, 7 }
  0x17   : > { %s1961_s10 = sshll.u32 %s190_s9, 3  ;;  %s2035_s9 = sshll.u32 %s2515_s19, 7 }
  0x18   : > { %s192_s13 = scalar_lea.vmem %s2960_s0, %s1961_s10  ;;  %s188_s10 = scalar_lea.vmem [#allocation2], %s1960_s8 }
  0x19   : > { %v194_v8 = vld [vmem:[%s192_s13] sm:$0xff]  ;;  %s1897_s11 = sshll.u32 %s188_s10, 4  ;;  %s2917_s14 = scalar_lea.hbm %s2964_s4, %s2035_s9  ;;  %s2919_s11 = int_to_ptr.vmem [resolvable:$true] %s1897_s11 }
  0x1a   : > { %2085 = vmatmul.mubr.msk.f32.vlgmr.msra.gmra.mrb[0].mxu0 %vm206_vm1, %v194_v8  ;;  %s2468_s19 = smov [#allocation2]  }
  0xed   : > { %v276_v10 = vpop.f32.mrb[0].mxu0 }
  0xee   : > { %v2565_v11 = vadd.f32 %v1962_v9, %v276_v10  ;;  %v2086_v12 = vpop.f32.mrb[1].mxu0  ;;  %v2437_v10 = vmov 4  }
  0xef   : > { %v2638_v12 = vsub.s32 3, %v2593_v30 }
  0xf0   : > { %303 = vrot.lane.b32.xlu0 %v2565_v11, %s2430_s22 }
  0xf4   : > { %436 = vrot.lane.b32.xlu0 %v2565_v11, %s2431_s23  ;;  %s2367_s23 = sshll.u32 %s2468_s19, 4  ;;  %s2368_s23 = int_to_ptr.vmem [resolvable:$false] %s2367_s23 }
  0xf5   : > { %p2370_p0 = scmp.lt.s32.totalorder %s2919_s11, %s2368_s23 }
 0x162   : > { %v304_v13 = vpop.permute.xlu0 %303 }
 0x163   : > { %2087 = vmatprep.subr.mxu1 %v304_v13  ;;  %306 = vxpose.xlu1.b32.start.end [1/1] (short) (narrow) %v304_v13, 32 }
 0x164   : > { %2088 = vmatpush3.msra.mxu1 %v304_v13 }
 0x166   : > { %v437_v14 = vpop.permute.xlu0 %436 }
 0x167   : > { %2095 = vmatprep.subr.mxu1 %v437_v14 }
 0x181   : > { %2233 = vset.pattern.permute.xlu1 %v2436_v62 }
 0x1e3   : > { %v322_v15 = vpop.trf.xlu1 }
 0x1e4   : > { %2089 = vmatprep.mubr.msk.f32.mxu1 %vm338_vm2, %v322_v15 }
 0x1e7   : > { %v323_v16 = vpop.trf.xlu1 }
 0x1e8   : > { %2090 = vmatmul.mubr.msk.f32.vlgmr.msra.gmra.mrb[0].mxu1 %vm338_vm2, %v323_v16 }
 0x1e9   : > { %2096 = vmatpush3.msra.mxu1 %v437_v14 }
 0x1eb   : > { %v324_v17 = vpop.trf.xlu1 }
 0x1ec   : > { %2092 = vmatprep.mubr.msk.f32.mxu1 %vm338_vm2, %v324_v17 }
 0x1ef   : > { %v325_v18 = vpop.trf.xlu1 }
 0x1f0   : > { %2093 = vmatmul.mubr.msk.f32.gmra.mrb[2].mxu1 %vm338_vm2, %v325_v18 }
 0x1f1   : > { %2097 = vmatprep.mubr.msk.f32.mxu1 %vm338_vm2, %v322_v15 }
 0x1f4   : > { %2098 = vmatmul.mubr.msk.f32.vlgmr.msra.gmra.mrb[4].mxu1 %vm338_vm2, %v323_v16 }
 0x1f5   : > { %2100 = vmatprep.mubr.msk.f32.mxu1 %vm338_vm2, %v324_v17 }
 0x1f8   : > { %2101 = vmatmul.mubr.msk.f32.gmra.mrb[6].mxu1 %vm338_vm2, %v325_v18 }
 0x2bb   : > { %v2578_v19 = vpop.f32.mrb[0].mxu1 }
 0x2bc   : > { %v417_v20 = vpop.f32.mrb[1].mxu1 }
 0x2bd   : > { %v418_v33 = vadd.f32 %v417_v20, %v298_v32  ;;  %v2645_v32 = vsub.s32 4, %v2593_v30 }
 0x2c3   : > { %v2580_v22 = vpop.f32.mrb[2].mxu1 }
 0x2c4   : > { %v2582_v23 = vpop.f32.mrb[3].mxu1 }
 0x2c7   : > { %v2584_v24 = vpop.f32.mrb[4].mxu1 }
 0x2c8   : > { %v505_v25 = vpop.f32.mrb[5].mxu1 }
 0x2c9   : > { %528 = vrot.lane.b32.xlu1 %v505_v25, %s2433_s27 }
 0x2cb   : > { %v2587_v26 = vpop.f32.mrb[6].mxu1 }
 0x2cc   : > { %v2589_v27 = vpop.f32.mrb[7].mxu1 }
 0x33b   : > { %v529_v34 = vpop.permute.xlu1 %528 }
 0x33c   : > { %v2604_v35 = vsel %vm206_vm1, %v418_v33, %v529_v34 }
 0x33d   : > { %2283 = vrcp.f32 %v2604_v35  ;;  %v1973_v36 = vadd.f32 -1.0, %v2604_v35 }
 0x33f   : > { %v723_v37 = vsel %vm287_vm3, %v1973_v36, %v2604_v35  ;;  %v554_v39 = vsel %vm552_vm4, %v1973_v36, %v2604_v35 }
 0x340   : > { %2105 = vmatprep.mubr.msk.f32.mxu0 %vm338_vm2, %v723_v37 }
 0x347   : > { %v2284_v38 = vpop.eup %2283 }
 0x348   : > { %548 = vperm.xlu0 %2229, %v2284_v38  }
 0x34c   : > { %557 = vperm.xlu0 %2229, %v554_v39  }
 0x350   : > { %2230 = vset.pattern.permute.xlu0 %v2434_v40 }
 0x3c7   : > { %v549_v42 = vpop.permute.xlu0 %548 }
 0x3c8   : > { %v551_v43 = vmul.f32 %v549_v42, %v2604_v35 }
 0x3ca   : > { %v563_v44 = vrot.slane %v551_v43, %v2615_v41 }
 0x3cb   : > { %v558_v45 = vpop.permute.xlu0 %557 }
 0x3cc   : > { %v564_v46 = vmul.f32 %v563_v44, %v558_v45  ;;  %v2439_v44 = vmov 6   ;;  %v2652_v45 = vsub.s32 5, %v2593_v30 }
 0x3ce   : > { %v565_v47 = vsub.f32 %v2604_v35, %v564_v46 }
 0x3d0   : > { %2285 = vrcp.f32 %v565_v47  ;;  %v1974_v49 = vadd.f32 -1.0, %v565_v47 }
 0x3d2   : > { %v576_v50 = vsel %vm574_vm5, %v1974_v49, %v565_v47 }
 0x3da   : > { %v2286_v48 = vpop.eup %2285 }
 0x3db   : > { %570 = vperm.xlu0 %2230, %v2286_v48  }
 0x3df   : > { %579 = vperm.xlu0 %2230, %v576_v50  }
 0x3e3   : > { %2231 = vset.pattern.permute.xlu0 %v2435_v51 }
 0x45a   : > { %v571_v53 = vpop.permute.xlu0 %570 }
 0x45b   : > { %v573_v54 = vmul.f32 %v571_v53, %v565_v47 }
 0x45d   : > { %v585_v55 = vrot.slane %v573_v54, %v2624_v52 }
 0x45e   : > { %v580_v56 = vpop.permute.xlu0 %579 }
 0x45f   : > { %v586_v57 = vmul.f32 %v585_v55, %v580_v56  ;;  %v2440_v56 = vmov 7  }
 0x461   : > { %v587_v58 = vsub.f32 %v565_v47, %v586_v57  ;;  %v2659_v57 = vsub.s32 6, %v2593_v30 }
 0x463   : > { %2287 = vrcp.f32 %v587_v58  ;;  %v1975_v60 = vadd.f32 -1.0, %v587_v58 }
 0x465   : > { %v598_v61 = vsel %vm596_vm6, %v1975_v60, %v587_v58 }
 0x46d   : > { %v2288_v59 = vpop.eup %2287 }
 0x46e   : > { %592 = vperm.xlu0 %2231, %v2288_v59  }
 0x472   : > { %601 = vperm.xlu0 %2231, %v598_v61  }
 0x476   : > { %2232 = vset.pattern.permute.xlu0 %v2436_v62 }
 0x4ed   : > { %v593_v0 = vpop.permute.xlu0 %592 }
 0x4ee   : > { %v595_v1 = vmul.f32 %v593_v0, %v587_v58 }
 0x4f0   : > { %v607_v2 = vrot.slane %v595_v1, %v2631_v63 }
 0x4f1   : > { %v602_v3 = vpop.permute.xlu0 %601 }
 0x4f2   : > { %v608_v4 = vmul.f32 %v607_v2, %v602_v3 }
 0x4f4   : > { %v609_v5 = vsub.f32 %v587_v58, %v608_v4  ;;  %v2668_v4 = vadd.s32 8, %v2593_v30 }
 0x4f6   : > { %2289 = vrcp.f32 %v609_v5  ;;  %v1976_v7 = vadd.f32 -1.0, %v609_v5  ;;  %vm288_vm12 = vcmp.eq.s32.totalorder %v2668_v4, %v2591_v29 }
 0x4f8   : > { %v620_v8 = vsel %vm618_vm7, %v1976_v7, %v609_v5  ;;  %v299_v7 = vsel %vm288_vm12, %v2598_v31, 0.0 }
 0x4f9   : > { %623 = vperm.xlu1 %2233, %v620_v8  }
 0x4fd   : > { %2234 = vset.pattern.permute.xlu1 %v2437_v10 }
 0x500   : > { %v2290_v9 = vpop.eup %2289 }
 0x501   : > { %614 = vperm.xlu0 %2232, %v2290_v9  }
 0x505   : > { %2235 = vset.pattern.permute.xlu0 %v2437_v10  ;;  %v423_v10 = vadd.f32 %v2578_v19, %v299_v7 }
 0x578   : > { %v624_v16 = vpop.permute.xlu1 %623 }
 0x580   : > { %v615_v13 = vpop.permute.xlu0 %614 }
 0x581   : > { %v617_v14 = vmul.f32 %v615_v13, %v609_v5 }
 0x583   : > { %v629_v15 = vrot.slane %v617_v14, %v2638_v12 }
 0x585   : > { %v630_v17 = vmul.f32 %v629_v15, %v624_v16 }
 0x587   : > { %v631_v18 = vsub.f32 %v609_v5, %v630_v17  ;;  %v2673_v5 = vsub.s32 7, %v2593_v30 }
 0x589   : > { %2291 = vrcp.f32 %v631_v18  ;;  %v1977_v20 = vadd.f32 -1.0, %v631_v18 }
 0x58b   : > { %v642_v21 = vsel %vm640_vm8, %v1977_v20, %v631_v18 }
 0x58c   : > { %645 = vperm.xlu0 %2235, %v642_v21   ;;  %v2441_v21 = vmov 8  }
 0x590   : > { %2237 = vset.pattern.permute.xlu0 %v2439_v44 }
 0x593   : > { %v2292_v25 = vpop.eup %2291 }
 0x594   : > { %636 = vperm.xlu1 %2234, %v2292_v25  }
 0x598   : > { %2236 = vset.pattern.permute.xlu1 %v2438_v28 }
 0x60b   : > { %v646_v37 = vpop.permute.xlu0 %645 }
 0x613   : > { %v637_v33 = vpop.permute.xlu1 %636 }
 0x614   : > { %v639_v34 = vmul.f32 %v637_v33, %v631_v18 }
 0x616   : > { %v651_v36 = vrot.slane %v639_v34, %v2645_v32 }
 0x618   : > { %v652_v38 = vmul.f32 %v651_v36, %v646_v37  ;;  %v2442_v37 = vmov 9  }
 0x61a   : > { %v653_v39 = vsub.f32 %v631_v18, %v652_v38 }
 0x61c   : > { %2293 = vrcp.f32 %v653_v39  ;;  %v1978_v42 = vadd.f32 -1.0, %v653_v39 }
 0x61e   : > { %v664_v43 = vsel %vm662_vm9, %v1978_v42, %v653_v39 }
 0x626   : > { %v2294_v40 = vpop.eup %2293 }
 0x627   : > { %658 = vperm.xlu1 %2236, %v2294_v40  }
 0x62b   : > { %667 = vperm.xlu1 %2236, %v664_v43  }
 0x62f   : > { %2238 = vset.pattern.permute.xlu1 %v2439_v44 }
 0x6a6   : > { %v659_v46 = vpop.permute.xlu1 %658 }
 0x6a7   : > { %v661_v47 = vmul.f32 %v659_v46, %v653_v39 }
 0x6a9   : > { %v673_v48 = vrot.slane %v661_v47, %v2652_v45 }
 0x6aa   : > { %v668_v49 = vpop.permute.xlu1 %667 }
 0x6ab   : > { %v674_v50 = vmul.f32 %v673_v48, %v668_v49  ;;  %v2443_v49 = vmov 10  }
 0x6ad   : > { %v675_v51 = vsub.f32 %v653_v39, %v674_v50 }
 0x6af   : > { %2295 = vrcp.f32 %v675_v51  ;;  %v1979_v53 = vadd.f32 -1.0, %v675_v51 }
 0x6b1   : > { %v686_v54 = vsel %vm684_vm10, %v1979_v53, %v675_v51 }
 0x6b2   : > { %689 = vperm.xlu1 %2238, %v686_v54  }
 0x6b6   : > { %2239 = vset.pattern.permute.xlu1 %v2440_v56 }
 0x6b9   : > { %v2296_v55 = vpop.eup %2295 }
 0x6ba   : > { %680 = vperm.xlu0 %2237, %v2296_v55  }
 0x6be   : > { %2240 = vset.pattern.permute.xlu0 %v2440_v56 }
 0x731   : > { %v690_v61 = vpop.permute.xlu1 %689 }
 0x739   : > { %v681_v58 = vpop.permute.xlu0 %680 }
 0x73a   : > { %v683_v59 = vmul.f32 %v681_v58, %v675_v51 }
 0x73c   : > { %v695_v60 = vrot.slane %v683_v59, %v2659_v57 }
 0x73e   : > { %v696_v62 = vmul.f32 %v695_v60, %v690_v61  ;;  %v2444_v61 = vmov 11  }
 0x740   : > { %v697_v0 = vsub.f32 %v675_v51, %v696_v62 }
 0x742   : > { %2297 = vrcp.f32 %v697_v0  ;;  %v1980_v1 = vadd.f32 -1.0, %v697_v0 }
 0x744   : > { %v708_v2 = vsel %vm706_vm11, %v1980_v1, %v697_v0 }
 0x745   : > { %711 = vperm.xlu0 %2240, %v708_v2  }
 0x749   : > { %2242 = vset.pattern.permute.xlu0 %v2441_v21 }
 0x74c   : > { %v2298_v3 = vpop.eup %2297 }
 0x74d   : > { %702 = vperm.xlu1 %2239, %v2298_v3  }
 0x751   : > { %530 = vrot.lane.b32.xlu1 %v2584_v24, %s2433_s27 }
 0x752   : > { %2241 = vset.pattern.permute.xlu1 %v2441_v21 }
 0x7c4   : > { %v712_v14 = vpop.permute.xlu0 %711 }
 0x7cc   : > { %v703_v8 = vpop.permute.xlu1 %702 }
 0x7cd   : > { %v705_v9 = vmul.f32 %v703_v8, %v697_v0 }
 0x7cf   : > { %v717_v13 = vrot.slane %v705_v9, %v2673_v5 }
 0x7d0   : > { %v531_v15 = vpop.permute.xlu1 %530 }
 0x7d1   : > { %v718_v24 = vmul.f32 %v717_v13, %v712_v14  ;;  %v541_v16 = vsel %vm206_vm1, %v423_v10, %v531_v15  ;;  %v2445_v13 = vmov 12   ;;  %v2708_v14 = vadd.s32 16, %v2593_v30 }
 0x7d2   : > { %v1981_v17 = vadd.f32 -1.0, %v541_v16  ;;  %v2711_v15 = vadd.s32 24, %v2593_v30 }
 0x7d3   : > { %v719_v18 = vsub.f32 %v697_v0, %v718_v24  ;;  %vm289_vm13 = vcmp.eq.s32.totalorder %v2708_v14, %v2591_v29 }
 0x7d4   : > { %v724_v20 = vsel %vm288_vm12, %v1981_v17, %v541_v16  ;;  %vm290_vm14 = vcmp.eq.s32.totalorder %v2711_v15, %v2591_v29 }
 0x7d5   : > { %2103 = vmatprep.subr.mxu0 %v719_v18 }
 0x7d6   : > { %2104 = vmatpush3.msra.mxu0 %v719_v18  ;;  %v301_v18 = vsel %vm290_vm14, %v2598_v31, 0.0 }
 0x7d7   : > { %2106 = vmatmul.mubr.msk.f32.vlgmr.msra.gmra.mrb[2].mxu0 %vm338_vm2, %v724_v20 }
 0x8aa   : > { %v2107_v25 = vpop.f32.mrb[2].mxu0 }
 0x8ab   : > { %v2680_v28 = vsub.f32 %v541_v16, %v2107_v25  ;;  %v2682_v19 = vpop.f32.mrb[3].mxu0 }
 0x8ad   : > { %v2685_v33 = vadd.f32 -1.0, %v2680_v28  ;;  %2299 = vrcp.f32 %v2680_v28 }
 0x8af   : > { %v837_v34 = vsel %vm552_vm4, %v2685_v33, %v2680_v28 }
 0x8b0   : > { %840 = vperm.xlu0 %2242, %v837_v34  }
 0x8b4   : > { %2244 = vset.pattern.permute.xlu0 %v2443_v49 }
 0x8b7   : > { %v2300_v36 = vpop.eup %2299 }
 0x8b8   : > { %832 = vperm.xlu1 %2241, %v2300_v36  }
 0x8bc   : > { %2243 = vset.pattern.permute.xlu1 %v2442_v37  ;;  %v433_v37 = vadd.f32 %v2580_v22, %v301_v18 }
 0x92f   : > { %v841_v42 = vpop.permute.xlu0 %840 }
 0x937   : > { %v833_v38 = vpop.permute.xlu1 %832 }
 0x938   : > { %v835_v39 = vmul.f32 %v833_v38, %v2680_v28 }
 0x93a   : > { %v846_v40 = vrot.slane %v835_v39, %v2615_v41 }
 0x93c   : > { %v847_v43 = vmul.f32 %v846_v40, %v841_v42 }
 0x93e   : > { %v848_v44 = vsub.f32 %v2680_v28, %v847_v43 }
 0x940   : > { %2301 = vrcp.f32 %v848_v44  ;;  %v1989_v47 = vadd.f32 -1.0, %v848_v44 }
 0x942   : > { %v858_v48 = vsel %vm574_vm5, %v1989_v47, %v848_v44 }
 0x94a   : > { %v2302_v46 = vpop.eup %2301 }
 0x94b   : > { %853 = vperm.xlu1 %2243, %v2302_v46   ;;  %v2446_v46 = vmov 13  }
 0x94f   : > { %861 = vperm.xlu1 %2243, %v858_v48  }
 0x953   : > { %2245 = vset.pattern.permute.xlu1 %v2443_v49 }
 0x9ca   : > { %v854_v50 = vpop.permute.xlu1 %853 }
 0x9cb   : > { %v856_v51 = vmul.f32 %v854_v50, %v848_v44 }
 0x9cd   : > { %v867_v53 = vrot.slane %v856_v51, %v2624_v52 }
 0x9ce   : > { %v862_v54 = vpop.permute.xlu1 %861 }
 0x9cf   : > { %v868_v55 = vmul.f32 %v867_v53, %v862_v54 }
 0x9d1   : > { %v869_v56 = vsub.f32 %v848_v44, %v868_v55 }
 0x9d3   : > { %2303 = vrcp.f32 %v869_v56  ;;  %v1990_v58 = vadd.f32 -1.0, %v869_v56 }
 0x9d5   : > { %v879_v59 = vsel %vm596_vm6, %v1990_v58, %v869_v56  ;;  %v2447_v58 = vmov 14  }
 0x9d6   : > { %882 = vperm.xlu1 %2245, %v879_v59  }
 0x9da   : > { %2246 = vset.pattern.permute.xlu1 %v2444_v61 }
 0x9dd   : > { %v2304_v60 = vpop.eup %2303 }
 0x9de   : > { %874 = vperm.xlu0 %2244, %v2304_v60  }
 0x9e2   : > { %2247 = vset.pattern.permute.xlu0 %v2444_v61 }
 0xa55   : > { %v883_v2 = vpop.permute.xlu1 %882 }
 0xa5d   : > { %v875_v62 = vpop.permute.xlu0 %874 }
 0xa5e   : > { %v877_v0 = vmul.f32 %v875_v62, %v869_v56 }
 0xa60   : > { %v888_v1 = vrot.slane %v877_v0, %v2631_v63 }
 0xa62   : > { %v889_v3 = vmul.f32 %v888_v1, %v883_v2 }
 0xa64   : > { %v890_v7 = vsub.f32 %v869_v56, %v889_v3 }
 0xa66   : > { %2305 = vrcp.f32 %v890_v7  ;;  %v1991_v8 = vadd.f32 -1.0, %v890_v7 }
 0xa68   : > { %v900_v9 = vsel %vm618_vm7, %v1991_v8, %v890_v7 }
 0xa69   : > { %903 = vperm.xlu0 %2247, %v900_v9  }
 0xa6d   : > { %2248 = vset.pattern.permute.xlu0 %v2445_v13 }
 0xa70   : > { %v2306_v10 = vpop.eup %2305 }
 0xa71   : > { %895 = vperm.xlu1 %2246, %v2306_v10   ;;  %v2448_v10 = vmov 15  }
 0xa75   : > { %532 = vrot.lane.b32.xlu1 %v2589_v27, %s2433_s27  ;;  %v300_v27 = vsel %vm289_vm13, %v2598_v31, 0.0 }
 0xa76   : > { %2249 = vset.pattern.permute.xlu1 %v2445_v13  ;;  %v428_v16 = vadd.f32 %v2582_v23, %v300_v27 }
 0xa79   : > { %534 = vrot.lane.b32.xlu1 %v2587_v26, %s2433_s27  ;;  %s2369_s27 = scalar_lea.vmem %s2368_s23, 256 }
 0xae8   : > { %v904_v20 = vpop.permute.xlu0 %903 }
 0xaf0   : > { %v896_v24 = vpop.permute.xlu1 %895 }
 0xaf1   : > { %v898_v26 = vmul.f32 %v896_v24, %v890_v7 }
 0xaf3   : > { %v909_v17 = vrot.slane %v898_v26, %v2638_v12 }
 0xaf4   : > { %v533_v21 = vpop.permute.xlu1 %532 }
 0xaf5   : > { %v910_v25 = vmul.f32 %v909_v17, %v904_v20  ;;  %v2728_v34 = vsel %vm206_vm1, %v428_v16, %v533_v21 }
 0xaf6   : > { %v1982_v36 = vadd.f32 -1.0, %v2728_v34 }
 0xaf7   : > { %v911_v38 = vsub.f32 %v890_v7, %v910_v25  ;;  %v2761_v25 = vsub.f32 %v2604_v35, %v2682_v19 }
 0xaf8   : > { %v535_v39 = vpop.permute.xlu1 %534  ;;  %v725_v23 = vsel %vm289_vm13, %v1982_v36, %v2728_v34 }
 0xaf9   : > { %2307 = vrcp.f32 %v911_v38  ;;  %v2737_v31 = vsel %vm206_vm1, %v433_v37, %v535_v39  ;;  %2108 = vmatprep.mubr.msk.f32.mxu0 %vm338_vm2, %v725_v23  ;;  %v1992_v40 = vadd.f32 -1.0, %v911_v38 }
 0xafa   : > { %v1983_v42 = vadd.f32 -1.0, %v2737_v31 }
 0xafb   : > { %v921_v43 = vsel %vm640_vm8, %v1992_v40, %v911_v38 }
 0xafc   : > { %924 = vperm.xlu1 %2249, %v921_v43   ;;  %v726_v22 = vsel %vm290_vm14, %v1983_v42, %v2737_v31 }
 0xafd   : > { %2109 = vmatmul.mubr.msk.f32.gmra.mrb[4].mxu0 %vm338_vm2, %v726_v22 }
 0xb00   : > { %2250 = vset.pattern.permute.xlu1 %v2446_v46 }
 0xb03   : > { %v2308_v44 = vpop.eup %2307 }
 0xb04   : > { %916 = vperm.xlu0 %2248, %v2308_v44  }
 0xb08   : > { %2251 = vset.pattern.permute.xlu0 %v2446_v46 }
 0xb7b   : > { %v925_v50 = vpop.permute.xlu1 %924 }
 0xb83   : > { %v917_v47 = vpop.permute.xlu0 %916 }
 0xb84   : > { %v919_v48 = vmul.f32 %v917_v47, %v911_v38 }
 0xb86   : > { %v930_v49 = vrot.slane %v919_v48, %v2645_v32 }
 0xb88   : > { %v931_v51 = vmul.f32 %v930_v49, %v925_v50 }
 0xb8a   : > { %v932_v53 = vsub.f32 %v911_v38, %v931_v51 }
 0xb8c   : > { %2309 = vrcp.f32 %v932_v53  ;;  %v1993_v54 = vadd.f32 -1.0, %v932_v53 }
 0xb8e   : > { %v942_v55 = vsel %vm662_vm9, %v1993_v54, %v932_v53 }
 0xb8f   : > { %945 = vperm.xlu0 %2251, %v942_v55  }
 0xb93   : > { %2253 = vset.pattern.permute.xlu0 %v2448_v10 }
 0xb96   : > { %v2310_v56 = vpop.eup %2309 }
 0xb97   : > { %937 = vperm.xlu1 %2250, %v2310_v56  }
 0xb9b   : > { %2252 = vset.pattern.permute.xlu1 %v2447_v58 }
 0xbd0   : > { %v2110_v59 = vpop.f32.mrb[4].mxu0 }
 0xbd1   : > { %v815_v60 = vpop.f32.mrb[5].mxu0  ;;  %v2766_v37 = vsub.f32 %v2737_v31, %v2110_v59 }
 0xbd2   : > { %v826_v36 = vsub.f32 %v2728_v34, %v815_v60  ;;  %v996_v34 = vadd.s32 8, %v2591_v29 }
 0xbd4   : > { %v1997_v38 = vadd.f32 -1.0, %v826_v36  ;;  %vm998_vm15 = vcmp.eq.s32.totalorder %v2668_v4, %v996_v34  ;;  %vm999_vm3 = vcmp.eq.s32.totalorder %v2708_v14, %v996_v34  ;;  %vm1000_vm12 = vcmp.eq.s32.totalorder %v2711_v15, %v996_v34 }
 0xbd5   : > { %v2450_v4 = vmov 16  }
 0xc0e   : > { %v946_v1 = vpop.permute.xlu0 %945 }
 0xc16   : > { %v938_v61 = vpop.permute.xlu1 %937 }
 0xc17   : > { %v940_v62 = vmul.f32 %v938_v61, %v932_v53 }
 0xc19   : > { %v951_v0 = vrot.slane %v940_v62, %v2652_v45  ;;  %v2451_v62 = vmov 17  }
 0xc1b   : > { %v952_v2 = vmul.f32 %v951_v0, %v946_v1 }
 0xc1d   : > { %v953_v3 = vsub.f32 %v932_v53, %v952_v2 }
 0xc1f   : > { %2311 = vrcp.f32 %v953_v3  ;;  %v1994_v8 = vadd.f32 -1.0, %v953_v3 }
 0xc21   : > { %v963_v9 = vsel %vm684_vm10, %v1994_v8, %v953_v3 }
 0xc29   : > { %v2312_v7 = vpop.eup %2311 }
 0xc2a   : > { %958 = vperm.xlu1 %2252, %v2312_v7  }
 0xc2e   : > { %966 = vperm.xlu1 %2252, %v963_v9  }
 0xc32   : > { %2254 = vset.pattern.permute.xlu1 %v2448_v10 }
 0xca9   : > { %v959_v13 = vpop.permute.xlu1 %958 }
 0xcaa   : > { %v961_v27 = vmul.f32 %v959_v13, %v953_v3 }
 0xcac   : > { %v972_v24 = vrot.slane %v961_v27, %v2659_v57  ;;  %v2452_v27 = vmov 18  }
 0xcad   : > { %v967_v26 = vpop.permute.xlu1 %966 }
 0xcae   : > { %v973_v16 = vmul.f32 %v972_v24, %v967_v26 }
 0xcb0   : > { %v974_v17 = vsub.f32 %v953_v3, %v973_v16 }
 0xcb2   : > { %2313 = vrcp.f32 %v974_v17  ;;  %v1995_v18 = vadd.f32 -1.0, %v974_v17 }
 0xcb4   : > { %v984_v20 = vsel %vm706_vm11, %v1995_v18, %v974_v17 }
 0xcb5   : > { %987 = vperm.xlu1 %2254, %v984_v20  }
 0xcb9   : > { %1010 = vrot.lane.b32.xlu1 %v2685_v33, %s2449_s30  ;;  %v1998_v33 = vadd.f32 -1.0, %v2766_v37 }
 0xcba   : > { %2256 = vset.pattern.permute.xlu1 %v2450_v4 }
 0xcbc   : > { %v2314_v21 = vpop.eup %2313 }
 0xcbd   : > { %1026 = vrot.lane.b32.xlu1 %v2680_v28, %s2449_s30  ;;  %979 = vperm.xlu0 %2253, %v2314_v21  }
 0xcc1   : > { %1024 = vrot.lane.b32.xlu0 %v2761_v25, %s2449_s30  ;;  %1028 = vrot.lane.b32.xlu1 %v826_v36, %s2449_s30 }
 0xcc2   : > { %2255 = vset.pattern.permute.xlu0 %v2450_v4 }
 0xcc5   : > { %1030 = vrot.lane.b32.xlu1 %v2766_v37, %s2449_s30  ;;  %1012 = vrot.lane.b32.xlu0 %v1997_v38, %s2449_s30 }
 0xcc9   : > { %1014 = vrot.lane.b32.xlu0 %v1998_v33, %s2449_s30  ;;  %v2453_v33 = vmov 19  }
 0xd34   : > { %v988_v39 = vpop.permute.xlu1 %987 }
 0xd38   : > { %v1011_v23 = vpop.permute.xlu1 %1010 }
 0xd3c   : > { %v1027_v40 = vpop.permute.xlu1 %1026  ;;  %v980_v35 = vpop.permute.xlu0 %979 }
 0xd3d   : > { %v982_v19 = vmul.f32 %v980_v35, %v974_v17  ;;  %v1037_v47 = vsel %vm998_vm15, %v1011_v23, %v1027_v40 }
 0xd3f   : > { %v993_v42 = vrot.slane %v982_v19, %v2673_v5 }
 0xd40   : > { %v1025_v43 = vpop.permute.xlu0 %1024  ;;  %v1029_v31 = vpop.permute.xlu1 %1028 }
 0xd41   : > { %v994_v22 = vmul.f32 %v993_v42, %v988_v39  ;;  %2113 = vmatprep.mubr.msk.f32.mxu1 %vm338_vm2, %v1025_v43 }
 0xd43   : > { %v995_v44 = vsub.f32 %v974_v17, %v994_v22 }
 0xd44   : > { %v1013_v46 = vpop.permute.xlu0 %1012  ;;  %v1031_v49 = vpop.permute.xlu1 %1030 }
 0xd45   : > { %2111 = vmatprep.subr.mxu1 %v995_v44  ;;  %v1038_v48 = vsel %vm999_vm3, %v1013_v46, %v1029_v31  ;;  %v2454_v31 = vmov 20  }
 0xd46   : > { %2112 = vmatpush3.msra.mxu1 %v995_v44 }
 0xd47   : > { %2114 = vmatmul.mubr.msk.f32.vlgmr.msra.gmra.mrb[8].mxu1 %vm338_vm2, %v1037_v47 }
 0xd48   : > { %2116 = vmatprep.mubr.msk.f32.mxu1 %vm338_vm2, %v1038_v48  ;;  %v1015_v50 = vpop.permute.xlu0 %1014 }
 0xd49   : > { %v1039_v51 = vsel %vm1000_vm12, %v1015_v50, %v1031_v49 }
 0xd4b   : > { %2117 = vmatmul.mubr.msk.f32.gmra.mrb[10].mxu1 %vm338_vm2, %v1039_v51 }
 0xe1a   : > { %v2779_v53 = vpop.f32.mrb[8].mxu1 }
 0xe1b   : > { %v2781_v54 = vpop.f32.mrb[9].mxu1 }
 0xe1e   : > { %v2783_v55 = vpop.f32.mrb[10].mxu1 }
 0xe1f   : > { %v1128_v56 = vpop.f32.mrb[11].mxu1 }
 0xe20   : > { %v2785_v58 = vsub.f32 %v826_v36, %v1128_v56 }
 0xe22   : > { %v2788_v59 = vadd.f32 -1.0, %v2785_v58  ;;  %2315 = vrcp.f32 %v2785_v58 }
 0xe24   : > { %v1150_v60 = vsel %vm552_vm4, %v2788_v59, %v2785_v58 }
 0xe25   : > { %1153 = vperm.xlu1 %2256, %v1150_v60   ;;  %v2455_v60 = vmov 21  }
 0xe29   : > { %2257 = vset.pattern.permute.xlu1 %v2451_v62 }
 0xe2c   : > { %v2316_v61 = vpop.eup %2315 }
 0xe2d   : > { %1145 = vperm.xlu0 %2255, %v2316_v61  }
 0xe31   : > { %2258 = vset.pattern.permute.xlu0 %v2451_v62 }
 0xea4   : > { %v1154_v3 = vpop.permute.xlu1 %1153 }
 0xeac   : > { %v1146_v0 = vpop.permute.xlu0 %1145 }
 0xead   : > { %v1148_v1 = vmul.f32 %v1146_v0, %v2785_v58 }
 0xeaf   : > { %v1159_v2 = vrot.slane %v1148_v1, %v2615_v41 }
 0xeb1   : > { %v1160_v7 = vmul.f32 %v1159_v2, %v1154_v3 }
 0xeb3   : > { %v1161_v8 = vsub.f32 %v2785_v58, %v1160_v7 }
 0xeb5   : > { %2317 = vrcp.f32 %v1161_v8  ;;  %v2004_v9 = vadd.f32 -1.0, %v1161_v8 }
 0xeb7   : > { %v1171_v10 = vsel %vm574_vm5, %v2004_v9, %v1161_v8 }
 0xeb8   : > { %1174 = vperm.xlu0 %2258, %v1171_v10   ;;  %v2456_v10 = vmov 22  }
 0xebc   : > { %2260 = vset.pattern.permute.xlu0 %v2453_v33 }
 0xebf   : > { %v2318_v13 = vpop.eup %2317 }
 0xec0   : > { %1166 = vperm.xlu1 %2257, %v2318_v13  }
 0xec4   : > { %2259 = vset.pattern.permute.xlu1 %v2452_v27 }
 0xf37   : > { %v1175_v17 = vpop.permute.xlu0 %1174 }
 0xf3f   : > { %v1167_v24 = vpop.permute.xlu1 %1166 }
 0xf40   : > { %v1169_v26 = vmul.f32 %v1167_v24, %v1161_v8 }
 0xf42   : > { %v1180_v16 = vrot.slane %v1169_v26, %v2624_v52 }
 0xf44   : > { %v1181_v18 = vmul.f32 %v1180_v16, %v1175_v17 }
 0xf46   : > { %v1182_v20 = vsub.f32 %v1161_v8, %v1181_v18 }
 0xf48   : > { %2319 = vrcp.f32 %v1182_v20  ;;  %v2005_v36 = vadd.f32 -1.0, %v1182_v20 }
 0xf4a   : > { %v1192_v38 = vsel %vm596_vm6, %v2005_v36, %v1182_v20  ;;  %v2457_v36 = vmov 23  }
 0xf52   : > { %v2320_v21 = vpop.eup %2319 }
 0xf53   : > { %1187 = vperm.xlu1 %2259, %v2320_v21  }
 0xf57   : > { %1195 = vperm.xlu1 %2259, %v1192_v38  }
 0xf5b   : > { %2261 = vset.pattern.permute.xlu1 %v2453_v33 }
 0xfd2   : > { %v1188_v39 = vpop.permute.xlu1 %1187 }
 0xfd3   : > { %v1190_v23 = vmul.f32 %v1188_v39, %v1182_v20 }
 0xfd5   : > { %v1201_v40 = vrot.slane %v1190_v23, %v2631_v63 }
 0xfd6   : > { %v1196_v35 = vpop.permute.xlu1 %1195 }
 0xfd7   : > { %v1202_v19 = vmul.f32 %v1201_v40, %v1196_v35 }
 0xfd9   : > { %v1203_v34 = vsub.f32 %v1182_v20, %v1202_v19 }
 0xfdb   : > { %2321 = vrcp.f32 %v1203_v34  ;;  %v2006_v42 = vadd.f32 -1.0, %v1203_v34 }
 0xfdd   : > { %v1213_v43 = vsel %vm618_vm7, %v2006_v42, %v1203_v34  ;;  %v1140_v42 = vsub.f32 %v2766_v37, %v2783_v55 }
 0xfde   : > { %1216 = vperm.xlu1 %2261, %v1213_v43  }
 0xfdf   : > { %v2013_v43 = vadd.f32 -1.0, %v1140_v42 }
 0xfe2   : > { %2262 = vset.pattern.permute.xlu1 %v2454_v31 }
 0xfe5   : > { %v2322_v22 = vpop.eup %2321 }
 0xfe6   : > { %1208 = vperm.xlu0 %2260, %v2322_v22  }
 0xfea   : > { %2263 = vset.pattern.permute.xlu0 %v2454_v31  ;;  %v2823_v31 = vsub.f32 %v2761_v25, %v2781_v54  ;;  %v1309_v25 = vadd.s32 16, %v2591_v29 }
 0xfec   : > { %vm1312_vm13 = vcmp.eq.s32.totalorder %v2708_v14, %v1309_v25  ;;  %vm1313_vm14 = vcmp.eq.s32.totalorder %v2711_v15, %v1309_v25 }
0x105d   : > { %v1217_v48 = vpop.permute.xlu1 %1216 }
0x1065   : > { %v1209_v44 = vpop.permute.xlu0 %1208 }
0x1066   : > { %v1211_v46 = vmul.f32 %v1209_v44, %v1203_v34  ;;  %v2828_v44 = vsub.f32 %v2680_v28, %v2779_v53 }
0x1068   : > { %v1222_v47 = vrot.slane %v1211_v46, %v2638_v12 }
0x106a   : > { %v1223_v49 = vmul.f32 %v1222_v47, %v1217_v48 }
0x106c   : > { %v1224_v50 = vsub.f32 %v1203_v34, %v1223_v49 }
0x106e   : > { %2323 = vrcp.f32 %v1224_v50  ;;  %v2007_v51 = vadd.f32 -1.0, %v1224_v50 }
0x1070   : > { %v1234_v4 = vsel %vm640_vm8, %v2007_v51, %v1224_v50 }
0x1071   : > { %1237 = vperm.xlu0 %2263, %v1234_v4  }
0x1075   : > { %2265 = vset.pattern.permute.xlu0 %v2456_v10 }
0x1078   : > { %v2324_v56 = vpop.eup %2323 }
0x1079   : > { %1229 = vperm.xlu1 %2262, %v2324_v56  }
0x107d   : > { %2264 = vset.pattern.permute.xlu1 %v2455_v60  ;;  %v2459_v60 = vmov 24  }
0x10f0   : > { %v1238_v1 = vpop.permute.xlu0 %1237 }
0x10f8   : > { %v1230_v61 = vpop.permute.xlu1 %1229 }
0x10f9   : > { %v1232_v62 = vmul.f32 %v1230_v61, %v1224_v50 }
0x10fb   : > { %v1243_v0 = vrot.slane %v1232_v62, %v2645_v32 }
0x10fd   : > { %v1244_v2 = vmul.f32 %v1243_v0, %v1238_v1 }
0x10ff   : > { %v1245_v3 = vsub.f32 %v1224_v50, %v1244_v2 }
0x1101   : > { %2325 = vrcp.f32 %v1245_v3  ;;  %v2008_v8 = vadd.f32 -1.0, %v1245_v3 }
0x1103   : > { %v1255_v9 = vsel %vm662_vm9, %v2008_v8, %v1245_v3  ;;  %v2460_v8 = vmov 25  }
0x110b   : > { %v2326_v7 = vpop.eup %2325 }
0x110c   : > { %1250 = vperm.xlu1 %2264, %v2326_v7  }
0x1110   : > { %1258 = vperm.xlu1 %2264, %v1255_v9  }
0x1114   : > { %2266 = vset.pattern.permute.xlu1 %v2456_v10 }
0x118b   : > { %v1251_v13 = vpop.permute.xlu1 %1250 }
0x118c   : > { %v1253_v27 = vmul.f32 %v1251_v13, %v1245_v3 }
0x118e   : > { %v1264_v24 = vrot.slane %v1253_v27, %v2652_v45 }
0x118f   : > { %v1259_v26 = vpop.permute.xlu1 %1258 }
0x1190   : > { %v1265_v16 = vmul.f32 %v1264_v24, %v1259_v26 }
0x1192   : > { %v1266_v17 = vsub.f32 %v1245_v3, %v1265_v16 }
0x1194   : > { %2327 = vrcp.f32 %v1266_v17  ;;  %v2009_v18 = vadd.f32 -1.0, %v1266_v17 }
0x1196   : > { %v1276_v20 = vsel %vm684_vm10, %v2009_v18, %v1266_v17 }
0x1197   : > { %1279 = vperm.xlu1 %2266, %v1276_v20   ;;  %v2461_v20 = vmov 26  }
0x119b   : > { %2267 = vset.pattern.permute.xlu1 %v2457_v36 }
0x119e   : > { %v2328_v21 = vpop.eup %2327 }
0x119f   : > { %1271 = vperm.xlu0 %2265, %v2328_v21  }
0x11a3   : > { %2268 = vset.pattern.permute.xlu0 %v2457_v36 }
0x1216   : > { %v1280_v23 = vpop.permute.xlu1 %1279 }
0x121e   : > { %v1272_v38 = vpop.permute.xlu0 %1271 }
0x121f   : > { %v1274_v33 = vmul.f32 %v1272_v38, %v1266_v17 }
0x1221   : > { %v1285_v39 = vrot.slane %v1274_v33, %v2659_v57 }
0x1223   : > { %v1286_v40 = vmul.f32 %v1285_v39, %v1280_v23 }
0x1225   : > { %v1287_v35 = vsub.f32 %v1266_v17, %v1286_v40 }
0x1227   : > { %2329 = vrcp.f32 %v1287_v35  ;;  %v2010_v19 = vadd.f32 -1.0, %v1287_v35 }
0x1229   : > { %v1297_v34 = vsel %vm706_vm11, %v2010_v19, %v1287_v35  ;;  %v2462_v19 = vmov 27  }
0x122a   : > { %1300 = vperm.xlu0 %2268, %v1297_v34  }
0x122e   : > { %1325 = vrot.lane.b32.xlu0 %v2788_v59, %s2458_s5 }
0x122f   : > { %2269 = vset.pattern.permute.xlu0 %v2459_v60 }
0x1231   : > { %v2330_v22 = vpop.eup %2329 }
0x1232   : > { %1327 = vrot.lane.b32.xlu0 %v2013_v43, %s2458_s5  ;;  %1292 = vperm.xlu1 %2267, %v2330_v22  }
0x1236   : > { %1337 = vrot.lane.b32.xlu1 %v2823_v31, %s2458_s5 }
0x1237   : > { %2270 = vset.pattern.permute.xlu1 %v2459_v60 }
0x123a   : > { %1339 = vrot.lane.b32.xlu1 %v2828_v44, %s2458_s5 }
0x123e   : > { %1341 = vrot.lane.b32.xlu1 %v2785_v58, %s2458_s5 }
0x1242   : > { %1343 = vrot.lane.b32.xlu1 %v1140_v42, %s2458_s5 }
0x12a9   : > { %v1301_v46 = vpop.permute.xlu0 %1300 }
0x12ad   : > { %v1326_v28 = vpop.permute.xlu0 %1325 }
0x12b1   : > { %v1293_v37 = vpop.permute.xlu1 %1292  ;;  %v1328_v51 = vpop.permute.xlu0 %1327 }
0x12b2   : > { %v1295_v55 = vmul.f32 %v1293_v37, %v1287_v35 }
0x12b4   : > { %v1306_v59 = vrot.slane %v1295_v55, %v2673_v5 }
0x12b5   : > { %v1338_v47 = vpop.permute.xlu1 %1337 }
0x12b6   : > { %v1307_v48 = vmul.f32 %v1306_v59, %v1301_v46  ;;  %2121 = vmatprep.mubr.msk.f32.mxu0 %vm338_vm2, %v1338_v47  ;;  %v2463_v47 = vmov 28  }
0x12b8   : > { %v1308_v54 = vsub.f32 %v1287_v35, %v1307_v48 }
0x12b9   : > { %v1340_v49 = vpop.permute.xlu1 %1339 }
0x12ba   : > { %2119 = vmatprep.subr.mxu0 %v1308_v54 }
0x12bb   : > { %2120 = vmatpush3.msra.mxu0 %v1308_v54 }
0x12bc   : > { %2122 = vmatmul.mubr.msk.f32.vlgmr.msra.gmra.mrb[6].mxu0 %vm338_vm2, %v1340_v49  ;;  %2135 = vmatprep.subr.bf16.mxu0 %v2429_v6 }
0x12bd   : > { %v1342_v53 = vpop.permute.xlu1 %1341 }
0x12be   : > { %v1351_v50 = vsel %vm1312_vm13, %v1326_v28, %v1342_v53 }
0x12bf   : > { %2124 = vmatprep.mubr.msk.f32.mxu0 %vm338_vm2, %v1351_v50 }
0x12c1   : > { %v1344_v4 = vpop.permute.xlu1 %1343 }
0x12c2   : > { %v1352_v56 = vsel %vm1313_vm14, %v1328_v51, %v1344_v4  ;;  %v2464_v4 = vmov 29  }
0x12c3   : > { %2125 = vmatmul.mubr.msk.f32.gmra.mrb[8].mxu0 %vm338_vm2, %v1352_v56 }
0x12c4   : > { %2139 = vmatprep.mubr.msk.bf16.mxu0 %vm2428_vm0, %v2429_v6 }
0x138f   : > { %v2843_v14 = vpop.f32.mrb[6].mxu0 }
0x1390   : > { %v2845_v61 = vpop.f32.mrb[7].mxu0 }
0x1396   : > { %v2126_v62 = vpop.f32.mrb[8].mxu0 }
0x1397   : > { %v2847_v0 = vsub.f32 %v1140_v42, %v2126_v62  ;;  %v2849_v1 = vpop.f32.mrb[9].mxu0 }
0x1398   : > { %v1452_v30 = vsub.f32 %v2785_v58, %v2849_v1 }
0x1399   : > { %v2852_v2 = vadd.f32 -1.0, %v2847_v0  ;;  %2331 = vrcp.f32 %v2847_v0 }
0x139b   : > { %v1463_v3 = vsel %vm552_vm4, %v2852_v2, %v2847_v0  ;;  %vm1767_vm4 = vcmask 523520  }
0x139c   : > { %1466 = vperm.xlu1 %2270, %v1463_v3  }
0x13a0   : > { %2271 = vset.pattern.permute.xlu1 %v2460_v8 }
0x13a3   : > { %v2332_v7 = vpop.eup %2331 }
0x13a4   : > { %1458 = vperm.xlu0 %2269, %v2332_v7  }
0x13a8   : > { %2272 = vset.pattern.permute.xlu0 %v2460_v8 }
0x141b   : > { %v1467_v27 = vpop.permute.xlu1 %1466 }
0x1423   : > { %v1459_v9 = vpop.permute.xlu0 %1458 }
0x1424   : > { %v1461_v10 = vmul.f32 %v1459_v9, %v2847_v0 }
0x1426   : > { %v1472_v13 = vrot.slane %v1461_v10, %v2615_v41 }
0x1428   : > { %v1473_v24 = vmul.f32 %v1472_v13, %v1467_v27  ;;  %v2465_v13 = vmov 30  }
0x142a   : > { %v1474_v26 = vsub.f32 %v2847_v0, %v1473_v24 }
0x142c   : > { %2333 = vrcp.f32 %v1474_v26  ;;  %v2019_v16 = vadd.f32 -1.0, %v1474_v26 }
0x142e   : > { %v1484_v17 = vsel %vm574_vm5, %v2019_v16, %v1474_v26 }
0x142f   : > { %1487 = vperm.xlu0 %2272, %v1484_v17  }
0x1433   : > { %2274 = vset.pattern.permute.xlu0 %v2462_v19 }
0x1436   : > { %v2334_v18 = vpop.eup %2333 }
0x1437   : > { %1479 = vperm.xlu1 %2271, %v2334_v18  }
0x143b   : > { %2273 = vset.pattern.permute.xlu1 %v2461_v20 }
0x14ae   : > { %v1488_v33 = vpop.permute.xlu0 %1487 }
0x14b6   : > { %v1480_v21 = vpop.permute.xlu1 %1479 }
0x14b7   : > { %v1482_v36 = vmul.f32 %v1480_v21, %v1474_v26 }
0x14b9   : > { %v1493_v38 = vrot.slane %v1482_v36, %v2624_v52  ;;  %v2466_v36 = vmov 31  }
0x14bb   : > { %v1494_v41 = vmul.f32 %v1493_v38, %v1488_v33 }
0x14bd   : > { %v1495_v39 = vsub.f32 %v1474_v26, %v1494_v41 }
0x14bf   : > { %2335 = vrcp.f32 %v1495_v39  ;;  %v2020_v40 = vadd.f32 -1.0, %v1495_v39 }
0x14c1   : > { %v1505_v35 = vsel %vm596_vm6, %v2020_v40, %v1495_v39 }
0x14c9   : > { %v2336_v23 = vpop.eup %2335 }
0x14ca   : > { %1500 = vperm.xlu1 %2273, %v2336_v23  }
0x14ce   : > { %1508 = vperm.xlu1 %2273, %v1505_v35  }
0x14d2   : > { %2275 = vset.pattern.permute.xlu1 %v2462_v19 }
0x1549   : > { %v1501_v34 = vpop.permute.xlu1 %1500 }
0x154a   : > { %v1503_v42 = vmul.f32 %v1501_v34, %v1495_v39  ;;  %v1450_v34 = vsub.f32 %v2823_v31, %v2845_v61  ;;  %v1622_v31 = vadd.s32 24, %v2591_v29 }
0x154c   : > { %v1514_v43 = vrot.slane %v1503_v42, %v2631_v63  ;;  %vm1626_vm0 = vcmp.eq.s32.totalorder %v2711_v15, %v1622_v31 }
0x154d   : > { %v1509_v22 = vpop.permute.xlu1 %1508 }
0x154e   : > { %v1515_v52 = vmul.f32 %v1514_v43, %v1509_v22 }
0x1550   : > { %v1516_v37 = vsub.f32 %v1495_v39, %v1515_v52 }
0x1552   : > { %2337 = vrcp.f32 %v1516_v37  ;;  %v2021_v55 = vadd.f32 -1.0, %v1516_v37 }
0x1554   : > { %v1526_v59 = vsel %vm618_vm7, %v2021_v55, %v1516_v37 }
0x1555   : > { %1529 = vperm.xlu1 %2275, %v1526_v59  }
0x1559   : > { %2276 = vset.pattern.permute.xlu1 %v2463_v47 }
0x155c   : > { %v2338_v46 = vpop.eup %2337 }
0x155d   : > { %1521 = vperm.xlu0 %2274, %v2338_v46  }
0x1561   : > { %2277 = vset.pattern.permute.xlu0 %v2463_v47 }
0x15d4   : > { %v1530_v49 = vpop.permute.xlu1 %1529 }
0x15dc   : > { %v1522_v48 = vpop.permute.xlu0 %1521 }
0x15dd   : > { %v1524_v25 = vmul.f32 %v1522_v48, %v1516_v37 }
0x15df   : > { %v1535_v54 = vrot.slane %v1524_v25, %v2638_v12 }
0x15e1   : > { %v1536_v63 = vmul.f32 %v1535_v54, %v1530_v49 }
0x15e3   : > { %v1537_v28 = vsub.f32 %v1516_v37, %v1536_v63 }
0x15e5   : > { %2339 = vrcp.f32 %v1537_v28  ;;  %v2022_v53 = vadd.f32 -1.0, %v1537_v28 }
0x15e7   : > { %v1547_v50 = vsel %vm640_vm8, %v2022_v53, %v1537_v28 }
0x15e8   : > { %1550 = vperm.xlu0 %2277, %v1547_v50  }
0x15ec   : > { %2279 = vset.pattern.permute.xlu0 %v2465_v13 }
0x15ef   : > { %v2340_v51 = vpop.eup %2339 }
0x15f0   : > { %1542 = vperm.xlu1 %2276, %v2340_v51  }
0x15f4   : > { %2278 = vset.pattern.permute.xlu1 %v2464_v4 }
0x1667   : > { %v1551_v3 = vpop.permute.xlu0 %1550 }
0x166f   : > { %v1543_v56 = vpop.permute.xlu1 %1542 }
0x1670   : > { %v1545_v60 = vmul.f32 %v1543_v56, %v1537_v28 }
0x1672   : > { %v1556_v62 = vrot.slane %v1545_v60, %v2645_v32 }
0x1674   : > { %v1557_v7 = vmul.f32 %v1556_v62, %v1551_v3 }
0x1676   : > { %v1558_v12 = vsub.f32 %v1537_v28, %v1557_v7 }
0x1678   : > { %2341 = vrcp.f32 %v1558_v12  ;;  %v2023_v9 = vadd.f32 -1.0, %v1558_v12 }
0x167a   : > { %v1568_v10 = vsel %vm662_vm9, %v2023_v9, %v1558_v12 }
0x1682   : > { %v2342_v8 = vpop.eup %2341 }
0x1683   : > { %1563 = vperm.xlu1 %2278, %v2342_v8  }
0x1687   : > { %1571 = vperm.xlu1 %2278, %v1568_v10  }
0x168b   : > { %2280 = vset.pattern.permute.xlu1 %v2465_v13 }
0x1702   : > { %v1564_v27 = vpop.permute.xlu1 %1563 }
0x1703   : > { %v1566_v24 = vmul.f32 %v1564_v27, %v1558_v12 }
0x1705   : > { %v1577_v26 = vrot.slane %v1566_v24, %v2652_v45 }
0x1706   : > { %v1572_v16 = vpop.permute.xlu1 %1571 }
0x1707   : > { %v1578_v32 = vmul.f32 %v1577_v26, %v1572_v16 }
0x1709   : > { %v1579_v17 = vsub.f32 %v1558_v12, %v1578_v32 }
0x170b   : > { %2343 = vrcp.f32 %v1579_v17  ;;  %v2024_v18 = vadd.f32 -1.0, %v1579_v17 }
0x170d   : > { %v1589_v20 = vsel %vm684_vm10, %v2024_v18, %v1579_v17 }
0x170e   : > { %1592 = vperm.xlu1 %2280, %v1589_v20  }
0x1712   : > { %2281 = vset.pattern.permute.xlu1 %v2466_v36 }
0x1715   : > { %v2344_v21 = vpop.eup %2343 }
0x1716   : > { %1584 = vperm.xlu0 %2279, %v2344_v21  }
0x171a   : > { %2282 = vset.pattern.permute.xlu0 %v2466_v36 }
0x178d   : > { %v1593_v39 = vpop.permute.xlu1 %1592 }
0x1795   : > { %v1585_v38 = vpop.permute.xlu0 %1584 }
0x1796   : > { %v1587_v33 = vmul.f32 %v1585_v38, %v1579_v17 }
0x1798   : > { %v1598_v41 = vrot.slane %v1587_v33, %v2659_v57  ;;  %v1451_v57 = vsub.f32 %v2828_v44, %v2843_v14 }
0x179a   : > { %v1599_v45 = vmul.f32 %v1598_v41, %v1593_v39 }
0x179c   : > { %v1600_v23 = vsub.f32 %v1579_v17, %v1599_v45 }
0x179e   : > { %2345 = vrcp.f32 %v1600_v23  ;;  %v2025_v40 = vadd.f32 -1.0, %v1600_v23 }
0x17a0   : > { %v1610_v35 = vsel %vm706_vm11, %v2025_v40, %v1600_v23 }
0x17a1   : > { %1613 = vperm.xlu0 %2282, %v1610_v35  }
0x17a5   : > { %1640 = vrot.lane.b32.xlu0 %v2852_v2, %s2467_s6 }
0x17a8   : > { %v2346_v19 = vpop.eup %2345 }
0x17a9   : > { %1656 = vrot.lane.b32.xlu0 %v2847_v0, %s2467_s6  ;;  %1605 = vperm.xlu1 %2281, %v2346_v19  }
0x17ad   : > { %1650 = vrot.lane.b32.xlu1 %v1450_v34, %s2467_s6 }
0x17b1   : > { %1652 = vrot.lane.b32.xlu1 %v1451_v57, %s2467_s6 }
0x17b5   : > { %1654 = vrot.lane.b32.xlu1 %v1452_v30, %s2467_s6 }
0x1820   : > { %v1614_v42 = vpop.permute.xlu0 %1613 }
0x1824   : > { %v1641_v37 = vpop.permute.xlu0 %1640 }
0x1828   : > { %v1606_v43 = vpop.permute.xlu1 %1605  ;;  %v1657_v58 = vpop.permute.xlu0 %1656 }
0x1829   : > { %v1608_v22 = vmul.f32 %v1606_v43, %v1600_v23 }
0x182b   : > { %v1619_v2 = vrot.slane %v1608_v22, %v2673_v5  ;;  %v1665_v5 = vsel %vm1626_vm0, %v1641_v37, %v1657_v58 }
0x182c   : > { %v1651_v52 = vpop.permute.xlu1 %1650 }
0x182d   : > { %v1620_v55 = vmul.f32 %v1619_v2, %v1614_v42  ;;  %2129 = vmatprep.mubr.msk.f32.mxu1 %vm338_vm2, %v1651_v52  ;;  %v1828_v2 = vpack.c.bf16 %v2565_v11, %v2565_v11 }
0x182f   : > { %v1621_v61 = vsub.f32 %v1600_v23, %v1620_v55 }
0x1830   : > { %v1653_v59 = vpop.permute.xlu1 %1652 }
0x1831   : > { %2127 = vmatprep.subr.mxu1 %v1621_v61 }
0x1832   : > { %2128 = vmatpush3.msra.mxu1 %v1621_v61 }
0x1833   : > { %2130 = vmatmul.mubr.msk.f32.vlgmr.msra.gmra.mrb[12].mxu1 %vm338_vm2, %v1653_v59 }
0x1834   : > { %v1655_v44 = vpop.permute.xlu1 %1654 }
0x1835   : > { %2132 = vmatprep.mubr.msk.f32.mxu1 %vm338_vm2, %v1655_v44 }
0x1837   : > { %2133 = vmatmul.mubr.msk.f32.gmra.mrb[14].mxu1 %vm338_vm2, %v1665_v5 }
0x1906   : > { %v2131_v14 = vpop.f32.mrb[12].mxu1 }
0x1907   : > { %v1764_v1 = vsub.f32 %v1451_v57, %v2131_v14  ;;  %v1744_v46 = vpop.f32.mrb[13].mxu1 }
0x1908   : > { %v1763_v29 = vsub.f32 %v1450_v34, %v1744_v46 }
0x1909   : > { %v1771_v47 = vsel %vm1767_vm4, %v1764_v1, -inf }
0x190a   : > { %1772 = vmax.xlane.f32.xlu0 %v1771_v47  ;;  %v2134_v48 = vpop.f32.mrb[14].mxu1  ;;  %v1768_v25 = vsel %vm1767_vm4, %v1763_v29, -inf }
0x190b   : > { %v1766_v15 = vsub.f32 %v2847_v0, %v2134_v48  ;;  %1769 = vmax.xlane.f32.xlu1 %v1768_v25  ;;  %v1754_v54 = vpop.f32.mrb[15].mxu1 }
0x190c   : > { %v1765_v49 = vsub.f32 %v1452_v30, %v1754_v54 }
0x190d   : > { %v1777_v63 = vsel %vm1767_vm4, %v1766_v15, -inf }
0x190e   : > { %v1774_v28 = vsel %vm1767_vm4, %v1765_v49, -inf }
0x190f   : > { %1778 = vmax.xlane.f32.xlu1 %v1777_v63  ;;  %1775 = vmax.xlane.f32.xlu0 %v1774_v28 }
0x1997   : > { %v1773_v53 = vpop.xlane.xlu0 %1772 }
0x1998   : > { %v1781_v50 = vsub.f32 %v1764_v1, %v1773_v53  ;;  %v1770_v51 = vpop.xlane.xlu1 %1769 }
0x1999   : > { %v1780_v4 = vsub.f32 %v1763_v29, %v1770_v51 }
0x199a   : > { %v1786_v56 = vmul.f32 1.442695, %v1781_v50 }
0x199b   : > { %v1784_v60 = vmul.f32 1.442695, %v1780_v4 }
0x199c   : > { %2347 = vpow2.f32 %v1786_v56  ;;  %v1776_v62 = vpop.xlane.xlu0 %1775  ;;  %v1779_v3 = vpop.xlane.xlu1 %1778 }
0x199d   : > { %2349 = vpow2.f32 %v1784_v60  ;;  %v1782_v7 = vsub.f32 %v1765_v49, %v1776_v62  ;;  %v1783_v12 = vsub.f32 %v1766_v15, %v1779_v3 }
0x199f   : > { %v1788_v0 = vmul.f32 1.442695, %v1782_v7  ;;  %v1790_v8 = vmul.f32 1.442695, %v1783_v12 }
0x19a1   : > { %2351 = vpow2.f32 %v1788_v0 }
0x19a2   : > { %2353 = vpow2.f32 %v1790_v8 }
0x19a6   : > { %v2348_v9 = vpop.eup %2347 }
0x19a7   : > { %v2350_v10 = vpop.eup %2349  ;;  %1798 = vrot.lane.b32.xlu1 %v2348_v9, %s2430_s22 }
0x19a8   : > { %1796 = vrot.lane.b32.xlu0 %v2350_v10, %s2430_s22 }
0x19ab   : > { %v2352_v13 = vpop.eup %2351 }
0x19ac   : > { %v2354_v27 = vpop.eup %2353  ;;  %1800 = vrot.lane.b32.xlu1 %v2352_v13, %s2430_s22 }
0x19ad   : > { %1802 = vrot.lane.b32.xlu0 %v2354_v27, %s2430_s22 }
0x1a19   : > { %v1799_v24 = vpop.permute.xlu1 %1798 }
0x1a1a   : > { %v1797_v26 = vpop.permute.xlu0 %1796  ;;  %v1811_v16 = vsel %vm206_vm1, %v1799_v24, 0.0 }
0x1a1b   : > { %v1808_v32 = vsel %vm206_vm1, %v1797_v26, 0.0  ;;  %1812 = vadd.xlane.f32.xlu0 %v1811_v16 }
0x1a1c   : > { %1809 = vadd.xlane.f32.xlu1 %v1808_v32 }
0x1a1e   : > { %v1801_v17 = vpop.permute.xlu1 %1800 }
0x1a1f   : > { %v1803_v18 = vpop.permute.xlu0 %1802  ;;  %v1814_v20 = vsel %vm206_vm1, %v1801_v17, 0.0 }
0x1a20   : > { %v1817_v21 = vsel %vm206_vm1, %v1803_v18, 0.0  ;;  %1815 = vadd.xlane.f32.xlu0 %v1814_v20 }
0x1a21   : > { %1818 = vadd.xlane.f32.xlu1 %v1817_v21 }
0x1aa8   : > { %v1813_v36 = vpop.xlane.xlu0 %1812 }
0x1aa9   : > { %2355 = vrcp.f32 %v1813_v36  ;;  %v1810_v38 = vpop.xlane.xlu1 %1809 }
0x1aaa   : > { %2357 = vrcp.f32 %v1810_v38 }
0x1aad   : > { %v1816_v33 = vpop.xlane.xlu0 %1815 }
0x1aae   : > { %2359 = vrcp.f32 %v1816_v33  ;;  %v1819_v41 = vpop.xlane.xlu1 %1818 }
0x1aaf   : > { %2361 = vrcp.f32 %v1819_v41 }
0x1ab3   : > { %v2356_v39 = vpop.eup %2355 }
0x1ab4   : > { %v2358_v45 = vpop.eup %2357  ;;  %v1825_v23 = vmul.f32 %v2356_v39, %v2348_v9 }
0x1ab5   : > { %v1824_v40 = vmul.f32 %v2358_v45, %v2350_v10 }
0x1ab7   : > { %v1829_v35 = vpack.c.bf16 %v1825_v23, %v1824_v40 }
0x1ab8   : > { %v2360_v19 = vpop.eup %2359 }
0x1ab9   : > { %v2362_v34 = vpop.eup %2361  ;;  %1833 = vrot.lane.b32.xlu0 %v1829_v35, %s2430_s22  ;;  %v1826_v57 = vmul.f32 %v2360_v19, %v2352_v13 }
0x1aba   : > { %v1827_v30 = vmul.f32 %v2362_v34, %v2354_v27 }
0x1abc   : > { %v1830_v42 = vpack.c.bf16 %v1827_v30, %v1826_v57 }
0x1abe   : > { %1835 = vrot.lane.b32.xlu1 %v1830_v42, %s2430_s22  ;;  %s2363_s22 = scalar_lea.vmem %s2919_s11, 128 }
0x1abf   : > { %p2364_p11 = scmp.ne.s32.totalorder %s2919_s11, %s2363_s22  ;;  %p2371_p1 = scmp.lt.s32.totalorder %s2369_s27, %s2363_s22 }
0x1ac1   : > { %p2365_p12 = pnand %p2364_p11, %p2532_p5  ;;  %p2372_p2 = por %p2371_p1, %p2370_p0 }
0x1ac3   : > { %p2366_p13 = pneg %p2365_p12 }
0x1ac5   : > { %p2373_p3 = pnand %p2372_p2, %p2366_p13 }
0x1b2b   : > { %v1834_v43 = vpop.permute.xlu0 %1833 }
0x1b2c   : > { %2136 = vmatpush3.bf16.msra.mxu0 %v1834_v43 }
0x1b2d   : > { %2137 = vmatprep.subr.bf16.mxu0 %v2429_v6 }
0x1b30   : > { %v1836_v22 = vpop.permute.xlu1 %1835 }
0x1b31   : > { %2138 = vmatpush3.bf16.msra.mxu0 %v1836_v22 }
0x1b34   : > { %2140 = vmatmul.mubr.msk.bf16.vlgmr.msra.gmra.mrb[12].mxu0 %vm206_vm1, %v1828_v2 }
0x1c07   : > { %v1876_v6 = vpop.f32.mrb[12].mxu0 }
0x1c08   : > { %1882 = vst.msk [vmem:[%s188_s10] sm:$0xff] %vm206_vm1, %v1876_v6  ;;  %v2141_v11 = vpop.f32.mrb[13].mxu0 }
0x1c09   : > { %v1879_v52 = vpop.f32.mrb[14].mxu0 }
0x1c0a   : > { %2376 = shalt.err (!%p2373_p3)
}
0x1c0b   : > { %s2377_s28 = scalar_lea.hbm %s2917_s14, 128  ;;  %s2381_s5 = scalar_lea.hbm %s2964_s4, 256 }
0x1c0c   : > { %p2378_p4 = scmp.ne.s32.totalorder %s2917_s14, %s2377_s28  ;;  %p2382_p9 = scmp.lt.u32.totalorder %s2917_s14, %s2964_s4 }
0x1c0d   : > { %p2383_p10 = scmp.lt.u32.totalorder %s2381_s5, %s2377_s28  ;;  %p2385_p12 = scmp.lt.u32.totalorder %s2377_s28, %s2917_s14 }
0x1c0e   : > { %p2379_p7 = pnand %p2378_p4, %p2532_p5 }
0x1c0f   : > { %p2384_p11 = por %p2383_p10, %p2382_p9 }
0x1c10   : > { %p2380_p8 = pneg %p2379_p7 }
0x1c11   : > { %p2386_p13 = por %p2385_p12, %p2384_p11 }
0x1c13   : > { %p2387_p0 = pnand %p2386_p13, %p2380_p8 }
0x1c15   : > { %2390 = shalt.err (!%p2387_p0)
}
0x1c16   : > { %2149 = dma.vmem_to_hbm [thread:$0]  (%p2532_p5), %s2919_s11, 128, %s2917_s14, %s1884_s20   ;;  %v2142_v37 = vpop.f32.mrb[15].mxu0 }
0x1c17 PF: > { %p2155_p1 = scmp.ge.s32.totalorder %s2425_s18, 2  ;;  %s1909_s8 = sand.u32 1, %s2413_s15  }
0x1c18   : > { %s1910_s9 = scalar_lea.sflag [#allocation3], %s1909_s8 }
0x1c19   : > { %p2152_p2 = pnand %p2155_p1, %p2536_p6 }
0x1c1b   : > { %2408 = dma.done.wait (!%p2152_p2), %s1910_s9, 128  }
0x1c1c   : > { %2410 = vsyncadd (!%p2152_p2), %s1910_s9, 4294967168  ;;  %p14_p3 = scmp.ge.s32.totalorder %s2519_s21, 4   ;;  %s2967_s15 = smov %s2417_s16 }
0x1c1d   : > { %s2968_s16 = smov %s2421_s17  ;;  %s2969_s17 = smov %s2530_s24 }
0x1c1e   : > { %s2970_s18 = smov %s2519_s21  ;;  %16 = sbr.rel (!%p14_p3) target bundleno = 3 (0x3), region = 71 }
0x1c25   :  { %1915 = vsyncpa [#allocation3], 1 }
0x1c26   :  { %1917 = vsyncpa [#allocation3 + $0x1], 1 }

</bundles_post_ra>
